<compile_context>
chip_gen: v7x
topology: tpu7x:2x2x1
jax: 0.10.0
libtpu: 0.0.40
codegen_flags: <defaults>
</compile_context>

<pallas_src>
import jax
import jax.numpy as jnp
from jax.experimental import pallas as pl
from jax.experimental.pallas import tpu as pltpu


def gru_gate_kernel(x_ref, y_ref, wy_ref, wx_ref, ug_ref, b_ref, out_ref):
    d = x_ref.shape[-1]            # padded feature width (multiple of 128)
    mm_dtype = wy_ref.dtype        # matmul operand dtype (f32 or bf16 weights)

    x = x_ref[...]
    y = y_ref[...]

    # Fused gate matmuls: weights stream from VMEM at the call sites.
    yw = jnp.dot(y.astype(mm_dtype), wy_ref[...],
                 preferred_element_type=jnp.float32)            # (tm, 3D)
    xu = jnp.dot(x.astype(mm_dtype), wx_ref[...],
                 preferred_element_type=jnp.float32)            # (tm, 2D)

    xf = x.astype(jnp.float32)

    # r = sigmoid(Wr(y) + Ur(x))
    r = jax.nn.sigmoid(yw[:, :d] + xu[:, :d])
    # z = sigmoid(Wz(y) + Uz(x) - bg)   (bias and -bg pre-folded into b_eff)
    z = jax.nn.sigmoid(yw[:, d:2 * d] + xu[:, d:] + b_ref[...])
    # h = tanh(Wg(y) + Ug(r * x))
    h = jnp.tanh(yw[:, 2 * d:]
                 + jnp.dot((r * xf).astype(mm_dtype), ug_ref[...],
                           preferred_element_type=jnp.float32))
    # g = (1 - z) * x + z * h
    out_ref[...] = ((1.0 - z) * xf + z * h).astype(out_ref.dtype)


def _round_up(a, b):
    return (a + b - 1) // b * b


def pack_params(params, *, bg, weight_dtype=None):
    """Fuse / pad the six gate weights + bias into kernel operands."""
    d = params["wr"].shape[0]
    dp = _round_up(d, 128)

    def pad_w(w):
        return jnp.pad(w, ((0, dp - d), (0, dp - d)))

    wy = jnp.concatenate(
        [pad_w(params["wr"]), pad_w(params["wz"]), pad_w(params["wg"])], axis=1)
    wx = jnp.concatenate([pad_w(params["ur"]), pad_w(params["uz"])], axis=1)
    ug = pad_w(params["ug"])
    b_eff = jnp.pad(params["b_uz"] - bg, ((0, 0), (0, dp - d)))   # (1, dp)

    if weight_dtype is not None:
        wy = wy.astype(weight_dtype)
        wx = wx.astype(weight_dtype)
        ug = ug.astype(weight_dtype)
    return wy, wx, ug, b_eff.astype(jnp.float32), d, dp


def _build_call(m_pad, dp, tm, out_dtype, weight_itemsize, act_itemsize,
                single_buffer_weights):
    grid_m = m_pad // tm

    const_kw = {}
    if single_buffer_weights:
        # Constant-index operands: a second pipeline buffer is pure VMEM waste.
        const_kw = dict(pipeline_mode=pl.Buffered(1))

    row_spec = pl.BlockSpec((tm, dp), lambda i: (i, 0))
    wy_spec = pl.BlockSpec((dp, 3 * dp), lambda i: (0, 0), **const_kw)
    wx_spec = pl.BlockSpec((dp, 2 * dp), lambda i: (0, 0), **const_kw)
    ug_spec = pl.BlockSpec((dp, dp), lambda i: (0, 0), **const_kw)
    b_spec = pl.BlockSpec((1, dp), lambda i: (0, 0), **const_kw)

    # VMEM budget: weights (+bias), double-buffered x/y/out row tiles and f32
    # intermediates; clamp to [32 MiB, 64 MiB] (64 MiB = v7x physical VMEM).
    n_wbuf = 1 if single_buffer_weights else 2
    w_bytes = n_wbuf * (6 * dp * dp * weight_itemsize + dp * 4)
    tile_bytes = 2 * 3 * tm * dp * act_itemsize       # x, y, out tiles (2-buf)
    tmp_bytes = 12 * tm * dp * 4                      # yw, xu, r, z, h, ...
    vmem_limit = int(min(64 << 20,
                         max(32 << 20,
                             w_bytes + tile_bytes + tmp_bytes + (8 << 20))))

    return pl.pallas_call(
        gru_gate_kernel,
        out_shape=jax.ShapeDtypeStruct((m_pad, dp), out_dtype),
        grid=(grid_m,),
        in_specs=[row_spec, row_spec, wy_spec, wx_spec, ug_spec, b_spec],
        out_specs=row_spec,
        compiler_params=pltpu.CompilerParams(
            dimension_semantics=("parallel",),
            vmem_limit_bytes=vmem_limit),
    )


def gru_gating(x, y, params, *, bg=0.1, tm=512, weight_dtype=None):
    """GTrXL GRU gating. x, y: [seq, batch, D] -> [seq, batch, D]."""
    seq, batch, d = x.shape
    m = seq * batch

    wy, wx, ug, b_eff, _, dp = pack_params(params, bg=bg,
                                           weight_dtype=weight_dtype)

    # Row tile: multiple of 8, as large as requested, and >= 2 grid steps when
    # possible so both v7x TensorCores get work.
    tm = max(8, min(_round_up(tm, 8), _round_up(m, 8)))
    m_pad = _round_up(m, tm)
    if m_pad // tm == 1 and m >= 16:
        tm = _round_up(m_pad // 2, 8)
        m_pad = _round_up(m, tm)

    x2 = jnp.pad(x.reshape(m, d), ((0, m_pad - m), (0, dp - d)))
    y2 = jnp.pad(y.reshape(m, d), ((0, m_pad - m), (0, dp - d)))
    call_args = (x2, y2, wy, wx, ug, b_eff)

    w_isz = jnp.dtype(wy.dtype).itemsize
    a_isz = jnp.dtype(x.dtype).itemsize

    out = None
    for single_buf in (True, False):
        try:
            fn = _build_call(m_pad, dp, tm, x.dtype, w_isz, a_isz, single_buf)
            out = fn(*call_args)
            break
        except Exception:
            # pl.Buffered(1) not supported by this JAX version -> default
            # double-buffered weight specs (correctness unchanged).
            if not single_buf:
                raise
    return out[:m, :d].reshape(seq, batch, d)


def reference_gru_gating(x, y, params, bg=0.1):
    """Pure-JAX reference matching PyTorch GRUGatingMechanism.forward."""
    def lin(v, w):  # weights stored (in, out) == torch W.T
        return v @ w
    r = jax.nn.sigmoid(lin(y, params["wr"]) + lin(x, params["ur"]))
    z = jax.nn.sigmoid(lin(y, params["wz"]) + lin(x, params["uz"])
                       + params["b_uz"][0] - bg)
    h = jnp.tanh(lin(y, params["wg"]) + lin(r * x, params["ug"]))
    return (1.0 - z) * x + z * h


def init_params(key, d):
    ks = jax.random.split(key, 7)
    scale = 1.0 / jnp.sqrt(d)

    def w(k):
        # stored pre-transposed relative to torch.nn.Linear: (in, out)
        return jax.random.uniform(k, (d, d), jnp.float32, -scale, scale)

    return {
        "wr": w(ks[0]), "ur": w(ks[1]), "wz": w(ks[2]), "uz": w(ks[3]),
        "b_uz": jax.random.uniform(ks[4], (1, d), jnp.float32, -scale, scale),
        "wg": w(ks[5]), "ug": w(ks[6]),
    }


if __name__ == "__main__":
    key = jax.random.PRNGKey(0)
    k_p, k_x, k_y = jax.random.split(key, 3)

    # Small but lane-dense demo shape (D a multiple of 128).
    seq, batch, d_model = 8, 2, 128
    bg = 0.1

    params = init_params(k_p, d_model)
    x = jax.random.normal(k_x, (seq, batch, d_model), jnp.float32)
    y = jax.random.normal(k_y, (seq, batch, d_model), jnp.float32)

    ref = reference_gru_gating(x, y, params, bg=bg)

    # f32-weight path.
    out = jax.block_until_ready(gru_gating(x, y, params, bg=bg))
    assert out.shape == (seq, batch, d_model)
    assert jnp.allclose(out, ref, atol=2e-3, rtol=2e-3), "f32 mismatch vs reference"

    # bf16-weight path (v6e/v7x MXU fast path): bf16 operands, f32 accumulation.
    out_bf16 = jax.block_until_ready(
        gru_gating(x, y, params, bg=bg, weight_dtype=jnp.bfloat16))
    assert out_bf16.shape == (seq, batch, d_model)
    assert jnp.allclose(out_bf16, ref, atol=5e-2, rtol=5e-2), "bf16 mismatch vs reference"

    print("KERNEL_OK")
</pallas_src>

<mosaic_0001>
module attributes {stable_mosaic.version = 11 : i64} {
  func.func @gru_gate_kernel(%arg0: i32, %arg1: memref<8x128xf32, #tpu.memory_space<vmem>>, %arg2: memref<8x128xf32, #tpu.memory_space<vmem>>, %arg3: memref<128x384xf32, #tpu.memory_space<vmem>>, %arg4: memref<128x256xf32, #tpu.memory_space<vmem>>, %arg5: memref<128x128xf32, #tpu.memory_space<vmem>>, %arg6: memref<1x128xf32, #tpu.memory_space<vmem>>, %arg7: memref<8x128xf32, #tpu.memory_space<vmem>>) attributes {dimension_semantics = [#tpu.dimension_semantics<parallel>], iteration_bounds = array<i64: 2>, scalar_prefetch = 0 : i64, scratch_operands = 0 : i64, tpu.core_type = #tpu.core_type<tc>, window_params = [{transform_indices = @transform_0, window_bounds = array<i64: 8, 128>}, {transform_indices = @transform_1, window_bounds = array<i64: 8, 128>}, {pipeline_mode = #tpu.pipeline_mode<synchronous>, transform_indices = @transform_2, window_bounds = array<i64: 128, 384>}, {pipeline_mode = #tpu.pipeline_mode<synchronous>, transform_indices = @transform_3, window_bounds = array<i64: 128, 256>}, {pipeline_mode = #tpu.pipeline_mode<synchronous>, transform_indices = @transform_4, window_bounds = array<i64: 128, 128>}, {pipeline_mode = #tpu.pipeline_mode<synchronous>, transform_indices = @transform_5, window_bounds = array<i64: 1, 128>}, {transform_indices = @transform_6, window_bounds = array<i64: 8, 128>}]} {
    %c0 = arith.constant 0 : index
    %c0_0 = arith.constant 0 : index
    %0 = vector.load %arg1[%c0, %c0_0] : memref<8x128xf32, #tpu.memory_space<vmem>>, vector<8x128xf32>
    %c0_1 = arith.constant 0 : index
    %c0_2 = arith.constant 0 : index
    %1 = vector.load %arg2[%c0_1, %c0_2] : memref<8x128xf32, #tpu.memory_space<vmem>>, vector<8x128xf32>
    %c0_3 = arith.constant 0 : index
    %c0_4 = arith.constant 0 : index
    %2 = vector.load %arg3[%c0_3, %c0_4] : memref<128x384xf32, #tpu.memory_space<vmem>>, vector<128x384xf32>
    %cst = arith.constant dense<0.000000e+00> : vector<8x384xf32>
    %3 = tpu.matmul %1, %2, %cst {dimension_numbers = #tpu.dot_dimension_numbers<[1], [0], [0], [1], [0, 0, 1, 1], [], []>} : vector<8x128xf32>, vector<128x384xf32>, vector<8x384xf32> -> vector<8x384xf32>
    %c0_5 = arith.constant 0 : index
    %c0_6 = arith.constant 0 : index
    %4 = vector.load %arg4[%c0_5, %c0_6] : memref<128x256xf32, #tpu.memory_space<vmem>>, vector<128x256xf32>
    %cst_7 = arith.constant dense<0.000000e+00> : vector<8x256xf32>
    %5 = tpu.matmul %0, %4, %cst_7 {dimension_numbers = #tpu.dot_dimension_numbers<[1], [0], [0], [1], [0, 0, 1, 1], [], []>} : vector<8x128xf32>, vector<128x256xf32>, vector<8x256xf32> -> vector<8x256xf32>
    %6 = vector.extract_strided_slice %3 {offsets = [0, 0], sizes = [8, 128], strides = [1, 1]} : vector<8x384xf32> to vector<8x128xf32>
    %7 = vector.extract_strided_slice %5 {offsets = [0, 0], sizes = [8, 128], strides = [1, 1]} : vector<8x256xf32> to vector<8x128xf32>
    %8 = arith.addf %6, %7 : vector<8x128xf32>
    %9 = arith.negf %8 : vector<8x128xf32>
    %10 = math.exp %9 : vector<8x128xf32>
    %cst_8 = arith.constant 1.000000e+00 : f32
    %11 = vector.broadcast %cst_8 : f32 to vector<8x128xf32>
    %12 = arith.addf %11, %10 : vector<8x128xf32>
    %13 = arith.divf %11, %12 : vector<8x128xf32>
    %14 = vector.extract_strided_slice %3 {offsets = [0, 128], sizes = [8, 128], strides = [1, 1]} : vector<8x384xf32> to vector<8x128xf32>
    %15 = vector.extract_strided_slice %5 {offsets = [0, 128], sizes = [8, 128], strides = [1, 1]} : vector<8x256xf32> to vector<8x128xf32>
    %16 = arith.addf %14, %15 : vector<8x128xf32>
    %c0_9 = arith.constant 0 : index
    %c0_10 = arith.constant 0 : index
    %17 = vector.load %arg6[%c0_9, %c0_10] : memref<1x128xf32, #tpu.memory_space<vmem>>, vector<1x128xf32>
    %18 = vector.broadcast %17 : vector<1x128xf32> to vector<8x128xf32>
    %19 = arith.addf %16, %18 : vector<8x128xf32>
    %20 = arith.negf %19 : vector<8x128xf32>
    %21 = math.exp %20 : vector<8x128xf32>
    %cst_11 = arith.constant 1.000000e+00 : f32
    %22 = vector.broadcast %cst_11 : f32 to vector<8x128xf32>
    %23 = arith.addf %22, %21 : vector<8x128xf32>
    %24 = arith.divf %22, %23 : vector<8x128xf32>
    %25 = vector.extract_strided_slice %3 {offsets = [0, 256], sizes = [8, 128], strides = [1, 1]} : vector<8x384xf32> to vector<8x128xf32>
    %26 = arith.mulf %13, %0 : vector<8x128xf32>
    %c0_12 = arith.constant 0 : index
    %c0_13 = arith.constant 0 : index
    %27 = vector.load %arg5[%c0_12, %c0_13] : memref<128x128xf32, #tpu.memory_space<vmem>>, vector<128x128xf32>
    %cst_14 = arith.constant dense<0.000000e+00> : vector<8x128xf32>
    %28 = tpu.matmul %26, %27, %cst_14 {dimension_numbers = #tpu.dot_dimension_numbers<[1], [0], [0], [1], [0, 0, 1, 1], [], []>} : vector<8x128xf32>, vector<128x128xf32>, vector<8x128xf32> -> vector<8x128xf32>
    %29 = arith.addf %25, %28 : vector<8x128xf32>
    %30 = math.tanh %29 : vector<8x128xf32>
    %cst_15 = arith.constant 1.000000e+00 : f32
    %31 = vector.broadcast %cst_15 : f32 to vector<8x128xf32>
    %32 = arith.subf %31, %24 : vector<8x128xf32>
    %33 = arith.mulf %32, %0 : vector<8x128xf32>
    %34 = arith.mulf %24, %30 : vector<8x128xf32>
    %35 = arith.addf %33, %34 : vector<8x128xf32>
    %c0_16 = arith.constant 0 : index
    %c0_17 = arith.constant 0 : index
    %36 = vector.load %arg7[%c0_16, %c0_17] : memref<8x128xf32, #tpu.memory_space<vmem>>, vector<8x128xf32>
    tpu.vector_store %arg7[%c0_16, %c0_17], %35 {strides = array<i32>} : memref<8x128xf32, #tpu.memory_space<vmem>>, vector<8x128xf32>,
    return
  }
  func.func @transform_0(%arg0: i32) -> (i32, i32) {
    %c0_i32 = arith.constant 0 : i32
    %c0_i32_0 = arith.constant 0 : i32
    return %arg0, %c0_i32 : i32, i32
  }
  func.func @transform_1(%arg0: i32) -> (i32, i32) {
    %c0_i32 = arith.constant 0 : i32
    %c0_i32_0 = arith.constant 0 : i32
    return %arg0, %c0_i32 : i32, i32
  }
  func.func @transform_2(%arg0: i32) -> (i32, i32) {
    %c0_i32 = arith.constant 0 : i32
    %c0_i32_0 = arith.constant 0 : i32
    %c0_i32_1 = arith.constant 0 : i32
    return %c0_i32, %c0_i32_0 : i32, i32
  }
  func.func @transform_3(%arg0: i32) -> (i32, i32) {
    %c0_i32 = arith.constant 0 : i32
    %c0_i32_0 = arith.constant 0 : i32
    %c0_i32_1 = arith.constant 0 : i32
    return %c0_i32, %c0_i32_0 : i32, i32
  }
  func.func @transform_4(%arg0: i32) -> (i32, i32) {
    %c0_i32 = arith.constant 0 : i32
    %c0_i32_0 = arith.constant 0 : i32
    %c0_i32_1 = arith.constant 0 : i32
    return %c0_i32, %c0_i32_0 : i32, i32
  }
  func.func @transform_5(%arg0: i32) -> (i32, i32) {
    %c0_i32 = arith.constant 0 : i32
    %c0_i32_0 = arith.constant 0 : i32
    %c0_i32_1 = arith.constant 0 : i32
    return %c0_i32, %c0_i32_0 : i32, i32
  }
  func.func @transform_6(%arg0: i32) -> (i32, i32) {
    %c0_i32 = arith.constant 0 : i32
    %c0_i32_0 = arith.constant 0 : i32
    return %arg0, %c0_i32 : i32, i32
  }
}

module attributes {stable_mosaic.version = 11 : i64} {
  func.func @gru_gate_kernel(%arg0: i32, %arg1: memref<8x128xf32, #tpu.memory_space<vmem>>, %arg2: memref<8x128xf32, #tpu.memory_space<vmem>>, %arg3: memref<128x384xf32, #tpu.memory_space<vmem>>, %arg4: memref<128x256xf32, #tpu.memory_space<vmem>>, %arg5: memref<128x128xf32, #tpu.memory_space<vmem>>, %arg6: memref<1x128xf32, #tpu.memory_space<vmem>>, %arg7: memref<8x128xf32, #tpu.memory_space<vmem>>) attributes {dimension_semantics = [#tpu.dimension_semantics<parallel>], iteration_bounds = array<i64: 2>, scalar_prefetch = 0 : i64, scratch_operands = 0 : i64, tpu.core_type = #tpu.core_type<tc>, window_params = [{transform_indices = @transform_0, window_bounds = array<i64: 8, 128>}, {transform_indices = @transform_1, window_bounds = array<i64: 8, 128>}, {pipeline_mode = #tpu.pipeline_mode<synchronous>, transform_indices = @transform_2, window_bounds = array<i64: 128, 384>}, {pipeline_mode = #tpu.pipeline_mode<synchronous>, transform_indices = @transform_3, window_bounds = array<i64: 128, 256>}, {pipeline_mode = #tpu.pipeline_mode<synchronous>, transform_indices = @transform_4, window_bounds = array<i64: 128, 128>}, {pipeline_mode = #tpu.pipeline_mode<synchronous>, transform_indices = @transform_5, window_bounds = array<i64: 1, 128>}, {transform_indices = @transform_6, window_bounds = array<i64: 8, 128>}]} {
    %c0 = arith.constant 0 : index
    %c0_0 = arith.constant 0 : index
    %0 = vector.load %arg1[%c0, %c0_0] : memref<8x128xf32, #tpu.memory_space<vmem>>, vector<8x128xf32>
    %c0_1 = arith.constant 0 : index
    %c0_2 = arith.constant 0 : index
    %1 = vector.load %arg2[%c0_1, %c0_2] : memref<8x128xf32, #tpu.memory_space<vmem>>, vector<8x128xf32>
    %c0_3 = arith.constant 0 : index
    %c0_4 = arith.constant 0 : index
    %2 = vector.load %arg3[%c0_3, %c0_4] : memref<128x384xf32, #tpu.memory_space<vmem>>, vector<128x384xf32>
    %cst = arith.constant dense<0.000000e+00> : vector<8x384xf32>
    %3 = tpu.matmul %1, %2, %cst {dimension_numbers = #tpu.dot_dimension_numbers<[1], [0], [0], [1], [0, 0, 1, 1], [], []>} : vector<8x128xf32>, vector<128x384xf32>, vector<8x384xf32> -> vector<8x384xf32>
    %c0_5 = arith.constant 0 : index
    %c0_6 = arith.constant 0 : index
    %4 = vector.load %arg4[%c0_5, %c0_6] : memref<128x256xf32, #tpu.memory_space<vmem>>, vector<128x256xf32>
    %cst_7 = arith.constant dense<0.000000e+00> : vector<8x256xf32>
    %5 = tpu.matmul %0, %4, %cst_7 {dimension_numbers = #tpu.dot_dimension_numbers<[1], [0], [0], [1], [0, 0, 1, 1], [], []>} : vector<8x128xf32>, vector<128x256xf32>, vector<8x256xf32> -> vector<8x256xf32>
    %6 = vector.extract_strided_slice %3 {offsets = [0, 0], sizes = [8, 128], strides = [1, 1]} : vector<8x384xf32> to vector<8x128xf32>
    %7 = vector.extract_strided_slice %5 {offsets = [0, 0], sizes = [8, 128], strides = [1, 1]} : vector<8x256xf32> to vector<8x128xf32>
    %8 = arith.addf %6, %7 : vector<8x128xf32>
    %9 = arith.negf %8 : vector<8x128xf32>
    %10 = math.exp %9 : vector<8x128xf32>
    %cst_8 = arith.constant 1.000000e+00 : f32
    %11 = vector.broadcast %cst_8 : f32 to vector<8x128xf32>
    %12 = arith.addf %11, %10 : vector<8x128xf32>
    %13 = arith.divf %11, %12 : vector<8x128xf32>
    %14 = vector.extract_strided_slice %3 {offsets = [0, 128], sizes = [8, 128], strides = [1, 1]} : vector<8x384xf32> to vector<8x128xf32>
    %15 = vector.extract_strided_slice %5 {offsets = [0, 128], sizes = [8, 128], strides = [1, 1]} : vector<8x256xf32> to vector<8x128xf32>
    %16 = arith.addf %14, %15 : vector<8x128xf32>
    %c0_9 = arith.constant 0 : index
    %c0_10 = arith.constant 0 : index
    %17 = vector.load %arg6[%c0_9, %c0_10] : memref<1x128xf32, #tpu.memory_space<vmem>>, vector<1x128xf32>
    %18 = vector.broadcast %17 : vector<1x128xf32> to vector<8x128xf32>
    %19 = arith.addf %16, %18 : vector<8x128xf32>
    %20 = arith.negf %19 : vector<8x128xf32>
    %21 = math.exp %20 : vector<8x128xf32>
    %cst_11 = arith.constant 1.000000e+00 : f32
    %22 = vector.broadcast %cst_11 : f32 to vector<8x128xf32>
    %23 = arith.addf %22, %21 : vector<8x128xf32>
    %24 = arith.divf %22, %23 : vector<8x128xf32>
    %25 = vector.extract_strided_slice %3 {offsets = [0, 256], sizes = [8, 128], strides = [1, 1]} : vector<8x384xf32> to vector<8x128xf32>
    %26 = arith.mulf %13, %0 : vector<8x128xf32>
    %c0_12 = arith.constant 0 : index
    %c0_13 = arith.constant 0 : index
    %27 = vector.load %arg5[%c0_12, %c0_13] : memref<128x128xf32, #tpu.memory_space<vmem>>, vector<128x128xf32>
    %cst_14 = arith.constant dense<0.000000e+00> : vector<8x128xf32>
    %28 = tpu.matmul %26, %27, %cst_14 {dimension_numbers = #tpu.dot_dimension_numbers<[1], [0], [0], [1], [0, 0, 1, 1], [], []>} : vector<8x128xf32>, vector<128x128xf32>, vector<8x128xf32> -> vector<8x128xf32>
    %29 = arith.addf %25, %28 : vector<8x128xf32>
    %30 = math.tanh %29 : vector<8x128xf32>
    %cst_15 = arith.constant 1.000000e+00 : f32
    %31 = vector.broadcast %cst_15 : f32 to vector<8x128xf32>
    %32 = arith.subf %31, %24 : vector<8x128xf32>
    %33 = arith.mulf %32, %0 : vector<8x128xf32>
    %34 = arith.mulf %24, %30 : vector<8x128xf32>
    %35 = arith.addf %33, %34 : vector<8x128xf32>
    %c0_16 = arith.constant 0 : index
    %c0_17 = arith.constant 0 : index
    %36 = vector.load %arg7[%c0_16, %c0_17] : memref<8x128xf32, #tpu.memory_space<vmem>>, vector<8x128xf32>
    tpu.vector_store %arg7[%c0_16, %c0_17], %35 {strides = array<i32>} : memref<8x128xf32, #tpu.memory_space<vmem>>, vector<8x128xf32>,
    return
  }
  func.func @transform_0(%arg0: i32) -> (i32, i32) {
    %c0_i32 = arith.constant 0 : i32
    %c0_i32_0 = arith.constant 0 : i32
    return %arg0, %c0_i32 : i32, i32
  }
  func.func @transform_1(%arg0: i32) -> (i32, i32) {
    %c0_i32 = arith.constant 0 : i32
    %c0_i32_0 = arith.constant 0 : i32
    return %arg0, %c0_i32 : i32, i32
  }
  func.func @transform_2(%arg0: i32) -> (i32, i32) {
    %c0_i32 = arith.constant 0 : i32
    %c0_i32_0 = arith.constant 0 : i32
    %c0_i32_1 = arith.constant 0 : i32
    return %c0_i32, %c0_i32_0 : i32, i32
  }
  func.func @transform_3(%arg0: i32) -> (i32, i32) {
    %c0_i32 = arith.constant 0 : i32
    %c0_i32_0 = arith.constant 0 : i32
    %c0_i32_1 = arith.constant 0 : i32
    return %c0_i32, %c0_i32_0 : i32, i32
  }
  func.func @transform_4(%arg0: i32) -> (i32, i32) {
    %c0_i32 = arith.constant 0 : i32
    %c0_i32_0 = arith.constant 0 : i32
    %c0_i32_1 = arith.constant 0 : i32
    return %c0_i32, %c0_i32_0 : i32, i32
  }
  func.func @transform_5(%arg0: i32) -> (i32, i32) {
    %c0_i32 = arith.constant 0 : i32
    %c0_i32_0 = arith.constant 0 : i32
    %c0_i32_1 = arith.constant 0 : i32
    return %c0_i32, %c0_i32_0 : i32, i32
  }
  func.func @transform_6(%arg0: i32) -> (i32, i32) {
    %c0_i32 = arith.constant 0 : i32
    %c0_i32_0 = arith.constant 0 : i32
    return %arg0, %c0_i32 : i32, i32
  }
}

</mosaic_0001>

<bundles_post_ra>
// kernel: tpu_custom_call.1
= control target key start
LH: loop header
LB: loop body
LE: loop exit
PB: predicated region body
PF: predicated region fallthrough
CT: control target
= control target key end

     0   :  { %s1839_s0 = inlined_call_operand.hbm [shape: f32[16,128], index: 0, kind: input, shape index: {}]   ;;  %s1840_s1 = inlined_call_operand.hbm [shape: f32[16,128], index: 1, kind: input, shape index: {}]   ;;  %s1841_s2 = inlined_call_operand.hbm [shape: f32[128,384], index: 2, kind: input, shape index: {}]   ;;  %s1842_s3 = inlined_call_operand.hbm [shape: f32[128,256], index: 3, kind: input, shape index: {}]   ;;  %s1843_s4 = inlined_call_operand.hbm [shape: f32[128,128], index: 4, kind: input, shape index: {}]   ;;  %s1844_s5 = inlined_call_operand.vmem [shape: f32[1,128], index: 5, kind: input, shape index: {}]   ;;  %s1845_s6 = inlined_call_operand.hbm [shape: f32[16,128], index: 6, kind: output, shape index: {}]  }
   0x1   :  { %1850 = sst [smem:[#allocation17_spill]] %s1841_s2 }
   0x2   :  { %1851 = sst [smem:[#allocation18_spill]] %s1842_s3 }
   0x3   :  { %1852 = sst [smem:[#allocation19_spill]] %s1843_s4 }
   0x4   :  { %11 = vsyncpa [#allocation3], 0 }
   0x5   :  { %13 = vsyncpa [#allocation3 + $0x1], 0 }
   0x6   :  { %14 = vsyncpa [#allocation6], 0 }
   0x7   :  { %16 = vsyncpa [#allocation6 + $0x1], 0 }
   0x8   :  { %17 = vsyncpa [#allocation9], 0 }
   0x9   :  { %18 = vsyncpa [#allocation4], 0 }
   0xa   :  { %20 = vsyncpa [#allocation4 + $0x1], 0  ;;  %s1511_s21 = smov 0   ;;  %s1513_s22 = smov 0  }
   0xb   :  { %s1515_s23 = smov 0   ;;  %s1517_s24 = smov 0  }
   0xc LB: > { %s1532_s25 = sadd.s32 4294967295, %s1459_s24   ;;  %s892_s26 = sadd.s32 4294967294, %s1459_s24   ;;  %s1459_s24 = sphi %s1517_s24, %s1876_s24   ;;  %s1455_s23 = sphi %s1515_s23, %s1875_s23   ;;  %s1451_s22 = sphi %s1513_s22, %s1874_s22   ;;  %s1447_s21 = sphi %s1511_s21, %s1873_s21  }
   0xd   : > { %p46_p0 = scmp.ne.s32.totalorder %s1451_s22, %s1447_s21  ;;  %p1846_p1 = scmp.eq.s32.totalorder %s1532_s25, 0 }
   0xe   : > { %p186_p3 = scmp.eq.s32.totalorder %s892_s26, 1  ;;  %p893_p5 = scmp.ge.s32.totalorder %s1459_s24, 1 }
   0xf   : > { %p1541_p4 = por %p1846_p1, %p46_p0  ;;  %p193_p7 = scmp.lt.s32.totalorder %s1459_s24, 3 }
  0x10   : > { %p1546_p6 = por %p186_p3, %p46_p0  ;;  %s1461_s30 = smov [#allocation7]  }
  0x11   : > { %s1853_s27 = scalar_select %p1541_p4, 1, 0 }
  0x12   : > { %s1854_s28 = scalar_select %p1546_p6, 1, 0 }
  0x13   : > { %p1551_p8 = pnand %p893_p5, %p193_p7  ;;  %s205_s7 = sshll.u32 %s1461_s30, 4  ;;  %s1555_s7 = int_to_ptr.vmem [resolvable:$true] %s205_s7 }
  0x14   : > { %s1462_s9 = smov [#allocation8]   ;;  %s1857_s2 = sld [smem:[#allocation17_spill]] }
  0x15   : > { %s1855_s29 = scalar_select %p1551_p8, 1, 0 }
  0x16   : > { %p1154_p9 = pneg %p1551_p8  ;;  %s218_s10 = sshll.u32 %s1462_s9, 4  ;;  %s1566_s10 = int_to_ptr.vmem [resolvable:$true] %s218_s10 }
  0x18   : > { %p1562_p11 = pnand %p1154_p9, %p1846_p1 }
  0x1a   : > { %s1237_s13 = scalar_lea.hbm %s1857_s2, 6144  ;;  %p1576_p13 = pneg %p1562_p11 }
  0x1b   : > { %p1238_p12 = scmp.ne.s32.totalorder %s1857_s2, %s1237_s13  ;;  %p1244_p5 = scmp.lt.u32.totalorder %s1237_s13, %s1857_s2 }
  0x1d   : > { %p1240_p0 = pnand %p1576_p13, %p1238_p12 }
  0x1f   : > { %p1241_p3 = pneg %p1240_p0 }
  0x21   : > { %p1246_p7 = pnand %p1244_p5, %p1241_p3 }
  0x23   : > { %1249 = shalt.err (!%p1246_p7)
}
  0x24   : > { %s1250_s19 = scalar_lea.vmem %s1555_s7, 6144  ;;  %p1258_p2 = scmp.lt.s32.totalorder %s1555_s7, %s1555_s7 }
  0x25   : > { %p1251_p9 = scmp.ne.s32.totalorder %s1555_s7, %s1250_s19  ;;  %p1259_p6 = scmp.lt.s32.totalorder %s1250_s19, %s1250_s19 }
  0x27   : > { %p1253_p10 = pnand %p1251_p9, %p1576_p13  ;;  %p1260_p12 = por %p1259_p6, %p1258_p2 }
  0x29   : > { %p1254_p1 = pneg %p1253_p10 }
  0x2b   : > { %p1261_p0 = pnand %p1260_p12, %p1254_p1 }
  0x2d   : > { %1264 = shalt.err (!%p1261_p0)
}
  0x2e   : > { %s1463_s20 = smov 384   ;;  %s1464_s26 = smov 24  }
  0x2f   : > { %1157 = dma.hbm_to_vmem [thread:$0]  (!%p1562_p11), %s1857_s2, 6144, %s1555_s7, [#allocation6], %s1463_s20, %s1463_s20, %s1464_s26  }
  0x30   : > { %s1859_s3 = sld [smem:[#allocation18_spill]] }
  0x36   : > { %s1265_s13 = scalar_lea.hbm %s1859_s3, 4096 }
  0x37   : > { %p1266_p2 = scmp.ne.s32.totalorder %s1859_s3, %s1265_s13  ;;  %p1272_p10 = scmp.lt.u32.totalorder %s1265_s13, %s1859_s3 }
  0x39   : > { %p1268_p1 = pnand %p1266_p2, %p1576_p13 }
  0x3b   : > { %p1269_p6 = pneg %p1268_p1 }
  0x3d   : > { %p1274_p3 = pnand %p1272_p10, %p1269_p6 }
  0x3f   : > { %1277 = shalt.err (!%p1274_p3)
}
  0x40   : > { %s1278_s7 = scalar_lea.vmem %s1566_s10, 4096  ;;  %p1286_p12 = scmp.lt.s32.totalorder %s1566_s10, %s1566_s10 }
  0x41   : > { %p1279_p5 = scmp.ne.s32.totalorder %s1566_s10, %s1278_s7  ;;  %p1287_p0 = scmp.lt.s32.totalorder %s1278_s7, %s1278_s7 }
  0x43   : > { %p1281_p7 = pnand %p1279_p5, %p1576_p13  ;;  %p1288_p2 = por %p1287_p0, %p1286_p12 }
  0x45   : > { %p1282_p9 = pneg %p1281_p7 }
  0x47   : > { %p1289_p1 = pnand %p1288_p2, %p1282_p9 }
  0x49   : > { %1292 = shalt.err (!%p1289_p1)
}
  0x4a   : > { %s1465_s19 = smov 256   ;;  %s1466_s20 = smov 16  }
  0x4b   : > { %1160 = dma.hbm_to_vmem [thread:$0]  (!%p1562_p11), %s1859_s3, 4096, %s1566_s10, [#allocation9], %s1465_s19, %s1465_s19, %s1466_s20  }
  0x4c   : > { %s1467_s9 = smov [#allocation10]   ;;  %s1860_s4 = sld [smem:[#allocation19_spill]] }
  0x4d   : > { %s231_s11 = sshll.u32 %s1467_s9, 4  ;;  %s232_s11 = int_to_ptr.vmem [resolvable:$true] %s231_s11 }
  0x52   : > { %s1293_s14 = scalar_lea.hbm %s1860_s4, 2048 }
  0x53   : > { %p1294_p6 = scmp.ne.s32.totalorder %s1860_s4, %s1293_s14  ;;  %p1300_p5 = scmp.lt.u32.totalorder %s1293_s14, %s1860_s4 }
  0x55   : > { %p1296_p10 = pnand %p1294_p6, %p1576_p13 }
  0x57   : > { %p1297_p3 = pneg %p1296_p10 }
  0x59   : > { %p1302_p7 = pnand %p1300_p5, %p1297_p3 }
  0x5b   : > { %1305 = shalt.err (!%p1302_p7)
}
  0x5c   : > { %s1306_s10 = scalar_lea.vmem %s232_s11, 2048  ;;  %p1314_p2 = scmp.lt.s32.totalorder %s232_s11, %s232_s11 }
  0x5d   : > { %p1307_p9 = scmp.ne.s32.totalorder %s232_s11, %s1306_s10  ;;  %p1315_p1 = scmp.lt.s32.totalorder %s1306_s10, %s1306_s10 }
  0x5f   : > { %p1309_p12 = pnand %p1307_p9, %p1576_p13  ;;  %p1316_p4 = por %p1315_p1, %p1314_p2 }
  0x61   : > { %p1310_p0 = pneg %p1309_p12 }
  0x63   : > { %p1317_p8 = pnand %p1316_p4, %p1310_p0 }
  0x65   : > { %1320 = shalt.err (!%p1317_p8)
}
  0x66   : > { %s1468_s19 = smov 128   ;;  %s1469_s16 = smov 8  }
  0x67   : > { %1163 = dma.hbm_to_vmem [thread:$0]  (!%p1562_p11), %s1860_s4, 2048, %s232_s11, [#allocation9], %s1468_s19, %s1468_s19, %s1469_s16  }
  0x68   : > { %s1639_s30 = sadd.s32 1, %s1459_s24   ;;  %s33_s12 = sadd.s32 1, %s1455_s23 }
  0x69   : > { %s30_s9 = ssub.s32 %s1459_s24, %s1639_s30  ;;  %p40_p8 = scmp.ne.s32.totalorder %s1455_s23, %s1451_s22 }
  0x6a   : > { %p31_p4 = scmp.eq.s32.totalorder %s30_s9, 0  ;;  %p41_p13 = scmp.eq.s32.totalorder %s1459_s24, 0 }
  0x6b   : > { %p1178_p6 = scmp.lt.s32.totalorder %s1459_s24, 2  ;;  %p1861_p3 = scmp.eq.s32.totalorder %s1532_s25, 1 }
  0x6c   : > { %s1649_s13 = scalar_select %p31_p4, %s1455_s23, %s33_s12  }
  0x6d   : > { %p42_p10 = por %p41_p13, %p40_p8  ;;  %p1653_p5 = por %p1861_p3, %p40_p8 }
  0x6e   : > { %s248_s8 = sand.u32 1, %s1455_s23   ;;  %s899_s15 = sshll.u32 %s1459_s24, 7 }
  0x6f   : > { %s1862_s14 = scalar_select %p1653_p5, 1, 0 }
  0x70   : > { %s1659_s11 = sshll.u32 %s248_s8, 3  ;;  %s1664_s7 = scalar_lea.hbm %s1839_s0, %s899_s15 }
  0x71   : > { %s252_s10 = scalar_lea.vmem [#allocation2], %s1659_s11  ;;  %p1667_p11 = pnand %p1178_p6, %p42_p10 }
  0x72   : > { %s259_s19 = sshll.u32 %s252_s10, 4  ;;  %s1676_s9 = scalar_lea.hbm %s1840_s1, %s899_s15  ;;  %s1671_s19 = int_to_ptr.vmem [resolvable:$true] %s259_s19 }
  0x73   : > { %s249_s12 = scalar_lea.sflag [#allocation3], %s248_s8  ;;  %s1321_s17 = scalar_lea.hbm %s1664_s7, 128 }
  0x74   : > { %p1322_p7 = scmp.ne.s32.totalorder %s1664_s7, %s1321_s17  ;;  %p1323_p9 = pneg %p1667_p11 }
  0x75   : > { %s1326_s2 = scalar_lea.hbm %s1839_s0, 256  ;;  %p1327_p2 = scmp.lt.u32.totalorder %s1664_s7, %s1839_s0 }
  0x76   : > { %p1324_p12 = pnand %p1323_p9, %p1322_p7  ;;  %p1328_p1 = scmp.lt.u32.totalorder %s1326_s2, %s1321_s17 }
  0x77   : > { %p1330_p8 = scmp.lt.u32.totalorder %s1321_s17, %s1664_s7 }
  0x78   : > { %p1325_p0 = pneg %p1324_p12  ;;  %p1329_p4 = por %p1328_p1, %p1327_p2 }
  0x7a   : > { %p1331_p13 = por %p1330_p8, %p1329_p4 }
  0x7c   : > { %p1332_p6 = pnand %p1331_p13, %p1325_p0 }
  0x7e   : > { %1335 = shalt.err (!%p1332_p6)
}
  0x7f   : > { %s1336_s8 = scalar_lea.vmem %s1671_s19, 128  ;;  %s1470_s15 = smov [#allocation2]  }
  0x80   : > { %p1337_p10 = scmp.ne.s32.totalorder %s1671_s19, %s1336_s8  ;;  %s1341_s20 = sshll.u32 %s1470_s15, 4  ;;  %s1342_s20 = int_to_ptr.vmem [resolvable:$false] %s1341_s20 }
  0x81   : > { %s1343_s3 = scalar_lea.vmem %s1342_s20, 256  ;;  %p1344_p12 = scmp.lt.s32.totalorder %s1671_s19, %s1342_s20 }
  0x82   : > { %p1339_p3 = pnand %p1337_p10, %p1323_p9  ;;  %p1345_p2 = scmp.lt.s32.totalorder %s1343_s3, %s1336_s8 }
  0x84   : > { %p1340_p7 = pneg %p1339_p3  ;;  %p1346_p1 = por %p1345_p2, %p1344_p12 }
  0x86   : > { %p1347_p4 = pnand %p1346_p1, %p1340_p7 }
  0x88   : > { %1350 = shalt.err (!%p1347_p4)
}
  0x89   : > { %1167 = dma.hbm_to_vmem [thread:$0]  (!%p1667_p11), %s1664_s7, 128, %s1671_s19, %s249_s12  }
  0x8a   : > { %s266_s2 = sand.u32 1, %s1459_s24   ;;  %s270_s4 = scalar_lea.vmem [#allocation5], %s1659_s11 }
  0x8b   : > { %s277_s26 = sshll.u32 %s270_s4, 4  ;;  %s267_s17 = scalar_lea.sflag [#allocation6], %s266_s2  ;;  %s278_s26 = int_to_ptr.vmem [resolvable:$true] %s277_s26 }
  0x8c   : > { %s1351_s18 = scalar_lea.hbm %s1676_s9, 128  ;;  %s1356_s15 = scalar_lea.hbm %s1840_s1, 256 }
  0x8d   : > { %p1352_p0 = scmp.ne.s32.totalorder %s1676_s9, %s1351_s18  ;;  %p1357_p6 = scmp.lt.u32.totalorder %s1676_s9, %s1840_s1 }
  0x8e   : > { %p1358_p10 = scmp.lt.u32.totalorder %s1356_s15, %s1351_s18  ;;  %p1360_p7 = scmp.lt.u32.totalorder %s1351_s18, %s1676_s9 }
  0x8f   : > { %p1354_p8 = pnand %p1352_p0, %p1323_p9 }
  0x90   : > { %p1359_p3 = por %p1358_p10, %p1357_p6 }
  0x91   : > { %p1355_p13 = pneg %p1354_p8 }
  0x92   : > { %p1361_p12 = por %p1360_p7, %p1359_p3 }
  0x94   : > { %p1362_p2 = pnand %p1361_p12, %p1355_p13 }
  0x96   : > { %1365 = shalt.err (!%p1362_p2)
}
  0x97   : > { %s1366_s11 = scalar_lea.vmem %s278_s26, 128  ;;  %s1471_s7 = smov [#allocation5]  }
  0x98   : > { %p1367_p1 = scmp.ne.s32.totalorder %s278_s26, %s1366_s11  ;;  %s1371_s19 = sshll.u32 %s1471_s7, 4  ;;  %s1372_s19 = int_to_ptr.vmem [resolvable:$false] %s1371_s19 }
  0x99   : > { %s1373_s12 = scalar_lea.vmem %s1372_s19, 256  ;;  %p1374_p8 = scmp.lt.s32.totalorder %s278_s26, %s1372_s19 }
  0x9a   : > { %p1369_p4 = pnand %p1367_p1, %p1323_p9  ;;  %p1375_p5 = scmp.lt.s32.totalorder %s1373_s12, %s1366_s11 }
  0x9c   : > { %p1370_p0 = pneg %p1369_p4  ;;  %p1376_p6 = por %p1375_p5, %p1374_p8 }
  0x9e   : > { %p1377_p10 = pnand %p1376_p6, %p1370_p0 }
  0xa0   : > { %1380 = shalt.err (!%p1377_p10)
}
  0xa1   : > { %1170 = dma.hbm_to_vmem [thread:$0]  (!%p1667_p11), %s1676_s9, 128, %s278_s26, %s267_s17  }
  0xa2   : > { %p1864_p13 = scmp.ne.s32.totalorder %s1855_s29, 0 }
  0xa3   : > { %s1727_s2 = sand.u32 (!%p1864_p13), 1, %s1451_s22   ;;  %p1865_p5 = scmp.ne.s32.totalorder (!%p1864_p13), %s1853_s27, 0 }
  0xa4   : > { %286 = sbr.rel (%p1864_p13) target bundleno = 730 (0x2da), region = 44  ;;  %s1730_s4 = sshll.u32 (!%p1864_p13), %s1727_s2, 3 }
  0xa5   : > { %s289_s18 = scalar_lea.sflag (!%p1864_p13), [#allocation3], %s1727_s2  ;;  %s292_s10 = scalar_lea.vmem (!%p1864_p13), [#allocation2], %s1730_s4 }
  0xab   : > { %1426 = dma.done.wait (%p1865_p5), %s289_s18, 128  }
  0xac   : > { %1428 = vsyncadd (%p1865_p5), %s289_s18, 4294967168  ;;  %s297_s29 = sand.u32 1, %s1532_s25   ;;  %s301_s9 = scalar_lea.vmem [#allocation5], %s1730_s4 }
  0xad   : > { %s298_s16 = scalar_lea.sflag [#allocation6], %s297_s29 }
  0xae   : > { %1430 = dma.done.wait (%p1865_p5), %s298_s16, 128  }
  0xaf   : > { %1432 = vsyncadd (%p1865_p5), %s298_s16, 4294967168  ;;  %p1866_p11 = scmp.eq.s32.totalorder %s1532_s25, 0 }
  0xb1   : > { %1434 = dma.done.wait (%p1866_p11), [#allocation6], 6144   ;;  %p1867_p9 = pmov %p1866_p11 }
  0xb3   : > { %1436 = vsyncadd (%p1867_p9), [#allocation6], 4294961152  ;;  %p1868_p3 = pmov %p1867_p9 }
  0xb5   : > { %1438 = dma.done.wait (%p1868_p3), [#allocation9], 6144   ;;  %p1869_p7 = pmov %p1868_p3 }
  0xb6   : > { %v1472_v0 = vmov 0.0   ;;  %v1473_v1 = vmov 0.0|0.0   ;;  %vm1474_vm0 = vmmov 0   ;;  %v350_v2 = vld [vmem:[#allocation7 + $0x8] sm:$0xff]  ;;  %v353_v3 = vld [vmem:[#allocation7 + $0x20] sm:$0xff]  ;;  %v352_v6 = vld [vmem:[#allocation7 + $0x18] sm:$0xff] }
  0xb7   : > { %1440 = vsyncadd (%p1869_p7), [#allocation9], 4294961152  ;;  %461 = vmatprep.mubr.f32.mxu0 %v1472_v0  ;;  %1052 = vmatprep.subr.bf16.mxu1 %v1473_v1  ;;  %v349_v4 = vld [vmem:[#allocation7] sm:$0xff]  ;;  %v1020_v5 = vpack.c.bf16 %v353_v3, %v350_v2  ;;  %v356_v7 = vld [vmem:[#allocation7 + $0x38] sm:$0xff]  ;;  %s913_s17 = sshll.u32 %s1532_s25, 7  ;;  %s346_s8 = scalar_lea.vmem [#allocation11], %s1730_s4 }
  0xb8   : > { %982 = vmatprep.mubr.msk.f32.mxu1 %vm1474_vm0, %v1472_v0  ;;  %v359_v8 = vld [vmem:[#allocation7 + $0x50] sm:$0xff]  ;;  %v1022_v9 = vpack.c.bf16 %v352_v6, %v349_v4  ;;  %v358_v12 = vld [vmem:[#allocation7 + $0x48] sm:$0xff]  ;;  %v365_v14 = vld [vmem:[#allocation7 + $0x80] sm:$0xff]  ;;  %s771_s15 = sshll.u32 %s346_s8, 4  ;;  %s1795_s11 = scalar_lea.hbm %s1845_s6, %s913_s17  ;;  %s1797_s15 = int_to_ptr.vmem [resolvable:$true] %s771_s15 }
  0xb9   : > { %v1024_v10 = vpack.c.bf16 %v359_v8, %v356_v7  ;;  %v355_v11 = vld [vmem:[#allocation7 + $0x30] sm:$0xff]  ;;  %v362_v13 = vld [vmem:[#allocation7 + $0x68] sm:$0xff]  ;;  %1021 = vmatprep.subr.bf16.mxu0 %v1020_v5  ;;  %v361_v17 = vld [vmem:[#allocation7 + $0x60] sm:$0xff]  ;;  %s758_s7 = scalar_lea.sflag [#allocation4], %s1727_s2  ;;  %s1381_s19 = scalar_lea.vmem %s1797_s15, 128 }
  0xba   : > { %1023 = vmatpush1.bf16.msra.mxu0 %v1022_v9  ;;  %v1026_v15 = vpack.c.bf16 %v358_v12, %v355_v11  ;;  %v1028_v16 = vpack.c.bf16 %v365_v14, %v362_v13  ;;  %v364_v18 = vld [vmem:[#allocation7 + $0x78] sm:$0xff]  ;;  %v371_v20 = vld [vmem:[#allocation7 + $0xb0] sm:$0xff]  ;;  %v370_v24 = vld [vmem:[#allocation7 + $0xa8] sm:$0xff]  ;;  %p1382_p12 = scmp.ne.s32.totalorder %s1797_s15, %s1381_s19  ;;  %p1870_p2 = scmp.ne.s32.totalorder %s1862_s14, 0 }
  0xbb   : > { %1025 = vmatprep.subr.bf16.mxu0 %v1024_v10  ;;  %v368_v19 = vld [vmem:[#allocation7 + $0x98] sm:$0xff]  ;;  %v1030_v21 = vpack.c.bf16 %v364_v18, %v361_v17  ;;  %v367_v23 = vld [vmem:[#allocation7 + $0x90] sm:$0xff]  ;;  %v374_v25 = vld [vmem:[#allocation7 + $0xc8] sm:$0xff]  ;;  %s1475_s25 = smov [#allocation11]  }
  0xbc   : > { %v1032_v22 = vpack.c.bf16 %v371_v20, %v368_v19  ;;  %v377_v26 = vld [vmem:[#allocation7 + $0xe0] sm:$0xff]  ;;  %v1034_v27 = vpack.c.bf16 %v370_v24, %v367_v23  ;;  %v376_v30 = vld [vmem:[#allocation7 + $0xd8] sm:$0xff]  ;;  %v383_v32 = vld [vmem:[#allocation7 + $0x110] sm:$0xff]  ;;  %p1383_p1 = pnand %p1382_p12, %p1870_p2  ;;  %s1385_s12 = sshll.u32 %s1475_s25, 4  ;;  %s1386_s12 = int_to_ptr.vmem [resolvable:$false] %s1385_s12 }
  0xbd   : > { %v1036_v28 = vpack.c.bf16 %v377_v26, %v374_v25  ;;  %v373_v29 = vld [vmem:[#allocation7 + $0xc0] sm:$0xff]  ;;  %v380_v31 = vld [vmem:[#allocation7 + $0xf8] sm:$0xff]  ;;  %v379_v35 = vld [vmem:[#allocation7 + $0xf0] sm:$0xff]  ;;  %s1387_s4 = scalar_lea.vmem %s1386_s12, 256  ;;  %p1388_p0 = scmp.lt.s32.totalorder %s1797_s15, %s1386_s12 }
  0xbe   : > { %1027 = vmatpush1.bf16.msra.mxu0 %v1026_v15  ;;  %v1038_v33 = vpack.c.bf16 %v376_v30, %v373_v29  ;;  %v1040_v34 = vpack.c.bf16 %v383_v32, %v380_v31  ;;  %v382_v36 = vld [vmem:[#allocation7 + $0x108] sm:$0xff]  ;;  %v389_v38 = vld [vmem:[#allocation7 + $0x140] sm:$0xff]  ;;  %v388_v42 = vld [vmem:[#allocation7 + $0x138] sm:$0xff]  ;;  %p1384_p4 = pneg %p1383_p1  ;;  %p1389_p8 = scmp.lt.s32.totalorder %s1387_s4, %s1381_s19 }
  0xbf   : > { %1029 = vmatprep.subr.bf16.mxu0 %v1028_v16  ;;  %v386_v37 = vld [vmem:[#allocation7 + $0x128] sm:$0xff]  ;;  %v1042_v39 = vpack.c.bf16 %v382_v36, %v379_v35  ;;  %v385_v40 = vld [vmem:[#allocation7 + $0x120] sm:$0xff]  ;;  %v392_v43 = vld [vmem:[#allocation7 + $0x158] sm:$0xff] }
  0xc0   : > { %v1044_v41 = vpack.c.bf16 %v389_v38, %v386_v37  ;;  %v395_v44 = vld [vmem:[#allocation7 + $0x170] sm:$0xff]  ;;  %v354_v46 = vld [vmem:[#allocation7 + $0x28] sm:$0xff]  ;;  %v357_v47 = vld [vmem:[#allocation7 + $0x40] sm:$0xff]  ;;  %v1046_v50 = vpack.c.bf16 %v388_v42, %v385_v40  ;;  %p1390_p6 = por %p1389_p8, %p1388_p0 }
  0xc1   : > { %v351_v45 = vld [vmem:[#allocation7 + $0x10] sm:$0xff]  ;;  %v360_v49 = vld [vmem:[#allocation7 + $0x58] sm:$0xff]  ;;  %v1048_v51 = vpack.c.bf16 %v395_v44, %v392_v43  ;;  %v394_v53 = vld [vmem:[#allocation7 + $0x168] sm:$0xff] }
  0xc2   : > { %1031 = vmatpush1.bf16.msra.mxu0 %v1030_v21  ;;  %v1053_v48 = vpack.c.bf16 %v354_v46, %v351_v45  ;;  %v391_v52 = vld [vmem:[#allocation7 + $0x150] sm:$0xff]  ;;  %v539_v54 = vld [vmem:[#allocation8 + $0x8] sm:$0xff]  ;;  %v1056_v55 = vpack.c.bf16 %v360_v49, %v357_v47  ;;  %v541_v56 = vld [vmem:[#allocation8 + $0x18] sm:$0xff]  ;;  %p1391_p10 = pnand %p1390_p6, %p1384_p4 }
  0xc3   : > { %1033 = vmatprep.subr.bf16.mxu0 %v1032_v22  ;;  %v363_v57 = vld [vmem:[#allocation7 + $0x70] sm:$0xff]  ;;  %v366_v58 = vld [vmem:[#allocation7 + $0x88] sm:$0xff]  ;;  %v1050_v59 = vpack.c.bf16 %v394_v53, %v391_v52  ;;  %v1076_v60 = vpack.c.bf16 %v541_v56, %v539_v54  ;;  %v538_v61 = vld [vmem:[#allocation8] sm:$0xff] }
  0xc4   : > { %1054 = vmatpush3.bf16.msra.mxu1 %v1053_v48  ;;  %v540_v62 = vld [vmem:[#allocation8 + $0x10] sm:$0xff]  ;;  %v543_v63 = vld [vmem:[#allocation8 + $0x28] sm:$0xff]  ;;  %v1059_v2 = vpack.c.bf16 %v366_v58, %v363_v57  ;;  %v545_v3 = vld [vmem:[#allocation8 + $0x38] sm:$0xff] }
  0xc5   : > { %1055 = vmatprep.subr.bf16.mxu1 %v1473_v1  ;;  %v369_v4 = vld [vmem:[#allocation7 + $0xa0] sm:$0xff]  ;;  %v372_v5 = vld [vmem:[#allocation7 + $0xb8] sm:$0xff]  ;;  %v1078_v7 = vpack.c.bf16 %v540_v62, %v538_v61  ;;  %v1080_v8 = vpack.c.bf16 %v545_v3, %v543_v63  ;;  %v544_v10 = vld [vmem:[#allocation8 + $0x30] sm:$0xff] }
  0xc6   : > { %1035 = vmatpush1.bf16.msra.mxu0 %v1034_v27  ;;  %v1760_v6 = vld [vmem:[%s301_s9] sm:$0xff]  ;;  %v542_v9 = vld [vmem:[#allocation8 + $0x20] sm:$0xff]  ;;  %v547_v11 = vld [vmem:[#allocation8 + $0x48] sm:$0xff]  ;;  %v1062_v12 = vpack.c.bf16 %v372_v5, %v369_v4 }
  0xc7   : > { %1037 = vmatprep.subr.bf16.mxu0 %v1036_v28  ;;  %v549_v13 = vld [vmem:[#allocation8 + $0x58] sm:$0xff]  ;;  %v375_v14 = vld [vmem:[#allocation7 + $0xd0] sm:$0xff]  ;;  %v378_v15 = vld [vmem:[#allocation7 + $0xe8] sm:$0xff]  ;;  %v1082_v16 = vpack.c.bf16 %v544_v10, %v542_v9 }
  0xc8   : > { %1057 = vmatpush3.bf16.msra.mxu1 %v1056_v55  ;;  %v1084_v17 = vpack.c.bf16 %v549_v13, %v547_v11  ;;  %v546_v18 = vld [vmem:[#allocation8 + $0x40] sm:$0xff]  ;;  %v548_v19 = vld [vmem:[#allocation8 + $0x50] sm:$0xff]  ;;  %v551_v20 = vld [vmem:[#allocation8 + $0x68] sm:$0xff]  ;;  %v1065_v21 = vpack.c.bf16 %v378_v15, %v375_v14 }
  0xc9   : > { %1058 = vmatprep.subr.bf16.mxu1 %v1473_v1  ;;  %v553_v22 = vld [vmem:[#allocation8 + $0x78] sm:$0xff]  ;;  %v381_v23 = vld [vmem:[#allocation7 + $0x100] sm:$0xff]  ;;  %v1086_v25 = vpack.c.bf16 %v548_v19, %v546_v18  ;;  %v552_v28 = vld [vmem:[#allocation8 + $0x70] sm:$0xff] }
  0xca   : > { %1039 = vmatpush1.bf16.msra.mxu0 %v1038_v33  ;;  %v384_v24 = vld [vmem:[#allocation7 + $0x118] sm:$0xff]  ;;  %v1088_v26 = vpack.c.bf16 %v553_v22, %v551_v20  ;;  %v550_v27 = vld [vmem:[#allocation8 + $0x60] sm:$0xff]  ;;  %v555_v29 = vld [vmem:[#allocation8 + $0x88] sm:$0xff] }
  0xcb   : > { %1041 = vmatprep.subr.bf16.mxu0 %v1040_v34  ;;  %v1068_v30 = vpack.c.bf16 %v384_v24, %v381_v23  ;;  %v557_v31 = vld [vmem:[#allocation8 + $0x98] sm:$0xff]  ;;  %v387_v32 = vld [vmem:[#allocation7 + $0x130] sm:$0xff]  ;;  %v390_v33 = vld [vmem:[#allocation7 + $0x148] sm:$0xff]  ;;  %v1090_v34 = vpack.c.bf16 %v552_v28, %v550_v27 }
  0xcc   : > { %1060 = vmatpush3.bf16.msra.mxu1 %v1059_v2  ;;  %v1092_v35 = vpack.c.bf16 %v557_v31, %v555_v29  ;;  %v554_v36 = vld [vmem:[#allocation8 + $0x80] sm:$0xff]  ;;  %v556_v37 = vld [vmem:[#allocation8 + $0x90] sm:$0xff]  ;;  %v559_v38 = vld [vmem:[#allocation8 + $0xa8] sm:$0xff] }
  0xcd   : > { %1061 = vmatprep.subr.bf16.mxu1 %v1473_v1  ;;  %v561_v40 = vld [vmem:[#allocation8 + $0xb8] sm:$0xff]  ;;  %v1094_v43 = vpack.c.bf16 %v556_v37, %v554_v36  ;;  %v558_v45 = vld [vmem:[#allocation8 + $0xa0] sm:$0xff]  ;;  %v560_v46 = vld [vmem:[#allocation8 + $0xb0] sm:$0xff] }
  0xce   : > { %1043 = vmatpush1.bf16.msra.mxu0 %v1042_v39  ;;  %v1071_v39 = vpack.c.bf16 %v390_v33, %v387_v32  ;;  %v396_v42 = vld [vmem:[#allocation7 + $0x178] sm:$0xff]  ;;  %v1096_v44 = vpack.c.bf16 %v561_v40, %v559_v38  ;;  %v563_v47 = vld [vmem:[#allocation8 + $0xc8] sm:$0xff]  ;;  %v1098_v52 = vpack.c.bf16 %v560_v46, %v558_v45  ;;  %v562_v54 = vld [vmem:[#allocation8 + $0xc0] sm:$0xff] }
  0xcf   : > { %1045 = vmatprep.subr.bf16.mxu0 %v1044_v41  ;;  %v393_v41 = vld [vmem:[#allocation7 + $0x160] sm:$0xff]  ;;  %v565_v49 = vld [vmem:[#allocation8 + $0xd8] sm:$0xff]  ;;  %v564_v55 = vld [vmem:[#allocation8 + $0xd0] sm:$0xff] }
  0xd0   : > { %1063 = vmatpush3.bf16.msra.mxu1 %v1062_v12  ;;  %v1074_v48 = vpack.c.bf16 %v396_v42, %v393_v41  ;;  %v1100_v53 = vpack.c.bf16 %v565_v49, %v563_v47  ;;  %v567_v57 = vld [vmem:[#allocation8 + $0xe8] sm:$0xff]  ;;  %v569_v58 = vld [vmem:[#allocation8 + $0xf8] sm:$0xff]  ;;  %v566_v61 = vld [vmem:[#allocation8 + $0xe0] sm:$0xff] }
  0xd1   : > { %1064 = vmatprep.subr.bf16.mxu1 %v1473_v1  ;;  %v568_v62 = vld [vmem:[#allocation8 + $0xf0] sm:$0xff]  ;;  %v1776_v2 = vld [vmem:[%s292_s10] sm:$0xff]  ;;  %v667_v4 = vld [vmem:[#allocation10 + $0x18] sm:$0xff] }
  0xd2   : > { %1047 = vmatpush1.bf16.msra.mxu0 %v1046_v50  ;;  %v664_v50 = vld [vmem:[#allocation10] sm:$0xff]  ;;  %v1106_v63 = vpack.c.bf16 %v568_v62, %v566_v61  ;;  %v666_v3 = vld [vmem:[#allocation10 + $0x10] sm:$0xff]  ;;  %v671_v9 = vld [vmem:[#allocation10 + $0x38] sm:$0xff] }
  0xd3   : > { %1049 = vmatprep.subr.bf16.mxu0 %v1048_v51  ;;  %v665_v51 = vld [vmem:[#allocation10 + $0x8] sm:$0xff]  ;;  %v1112_v5 = vpack.c.bf16 %v667_v4, %v666_v3  ;;  %v672_v11 = vld [vmem:[#allocation10 + $0x40] sm:$0xff]  ;;  %v674_v14 = vld [vmem:[#allocation10 + $0x50] sm:$0xff] }
  0xd4   : > { %1066 = vmatpush3.bf16.msra.mxu1 %v1065_v21  ;;  %v1109_v56 = vpack.c.bf16 %v665_v51, %v664_v50  ;;  %v673_v12 = vld [vmem:[#allocation10 + $0x48] sm:$0xff]  ;;  %v675_v15 = vld [vmem:[#allocation10 + $0x58] sm:$0xff]  ;;  %v678_v19 = vld [vmem:[#allocation10 + $0x70] sm:$0xff] }
  0xd5   : > { %1067 = vmatprep.subr.bf16.mxu1 %v1473_v1  ;;  %v1121_v13 = vpack.c.bf16 %v673_v12, %v672_v11  ;;  %v677_v18 = vld [vmem:[#allocation10 + $0x68] sm:$0xff]  ;;  %v679_v21 = vld [vmem:[#allocation10 + $0x78] sm:$0xff] }
  0xd6   : > { %1051 = vmatpush1.bf16.msra.mxu0 %v1050_v59  ;;  %v1102_v59 = vpack.c.bf16 %v564_v55, %v562_v54  ;;  %v1130_v22 = vpack.c.bf16 %v679_v21, %v678_v19 }
  0xd7   : > { %1077 = vmatprep.subr.bf16.mxu0 %v1076_v60  ;;  %v1104_v60 = vpack.c.bf16 %v569_v58, %v567_v57 }
  0xd8   : > { %1069 = vmatpush3.bf16.msra.mxu1 %v1068_v30  ;;  %v910_v30 = vld [vmem:[%s1844_s5] ss:$0 sm:$0xff] }
  0xd9   : > { %462 = vmatmul.mubr.f32.vlgmr.msra.gmra.mrb[0].mxu0 %v1760_v6  ;;  %1070 = vmatprep.subr.bf16.mxu1 %v1473_v1 }
  0xda   : > { %1079 = vmatpush1.bf16.msra.mxu0 %v1078_v7  ;;  %634 = vmatprep.mubr.f32.mxu0 %v1472_v0  ;;  %v669_v7 = vld [vmem:[#allocation10 + $0x28] sm:$0xff] }
  0xdb   : > { %1081 = vmatprep.subr.bf16.mxu0 %v1080_v8 }
  0xdc   : > { %1072 = vmatpush3.bf16.msra.mxu1 %v1071_v39 }
  0xdd   : > { %1073 = vmatprep.subr.bf16.mxu1 %v1473_v1 }
  0xde   : > { %1083 = vmatpush1.bf16.msra.mxu0 %v1082_v16  ;;  %v1124_v16 = vpack.c.bf16 %v675_v15, %v674_v14 }
  0xdf   : > { %1085 = vmatprep.subr.bf16.mxu0 %v1084_v17  ;;  %v676_v17 = vld [vmem:[#allocation10 + $0x60] sm:$0xff] }
  0xe0   : > { %1075 = vmatpush3.bf16.msra.mxu1 %v1074_v48  ;;  %v1127_v20 = vpack.c.bf16 %v677_v18, %v676_v17 }
  0xe1   : > { %1108 = vmatprep.subr.bf16.mxu1 %v1473_v1 }
  0xe2   : > { %1087 = vmatpush1.bf16.msra.mxu0 %v1086_v25 }
  0xe3   : > { %1089 = vmatprep.subr.bf16.mxu0 %v1088_v26  ;;  %983 = vmatmul.mubr.f32.vlgmr.msra.gmra.mrb[0].mxu1 %v1760_v6  ;;  %v668_v6 = vld [vmem:[#allocation10 + $0x20] sm:$0xff] }
  0xe4   : > { %1110 = vmatpush3.bf16.msra.mxu1 %v1109_v56  ;;  %1017 = vmatprep.mubr.msk.f32.mxu1 %vm1474_vm0, %v1472_v0  ;;  %v1115_v8 = vpack.c.bf16 %v669_v7, %v668_v6  ;;  %v670_v0 = vld [vmem:[#allocation10 + $0x30] sm:$0xff] }
  0xe5   : > { %1111 = vmatprep.subr.bf16.mxu1 %v1473_v1  ;;  %v1118_v10 = vpack.c.bf16 %v671_v9, %v670_v0 }
  0xe6   : > { %1091 = vmatpush1.bf16.msra.mxu0 %v1090_v34 }
  0xe7   : > { %1093 = vmatprep.subr.bf16.mxu0 %v1092_v35 }
  0xe8   : > { %1113 = vmatpush3.bf16.msra.mxu1 %v1112_v5 }
  0xe9   : > { %1114 = vmatprep.subr.bf16.mxu1 %v1473_v1 }
  0xea   : > { %1095 = vmatpush1.bf16.msra.mxu0 %v1094_v43 }
  0xeb   : > { %1097 = vmatprep.subr.bf16.mxu0 %v1096_v44 }
  0xec   : > { %1116 = vmatpush3.bf16.msra.mxu1 %v1115_v8 }
  0xed   : > { %1117 = vmatprep.subr.bf16.mxu1 %v1473_v1 }
  0xee   : > { %1099 = vmatpush1.bf16.msra.mxu0 %v1098_v52 }
  0xef   : > { %1101 = vmatprep.subr.bf16.mxu0 %v1100_v53 }
  0xf0   : > { %1119 = vmatpush3.bf16.msra.mxu1 %v1118_v10 }
  0xf1   : > { %1120 = vmatprep.subr.bf16.mxu1 %v1473_v1 }
  0xf2   : > { %1103 = vmatpush1.bf16.msra.mxu0 %v1102_v59 }
  0xf3   : > { %1105 = vmatprep.subr.bf16.mxu0 %v1104_v60 }
  0xf4   : > { %1122 = vmatpush3.bf16.msra.mxu1 %v1121_v13 }
  0xf5   : > { %1123 = vmatprep.subr.bf16.mxu1 %v1473_v1 }
  0xf6   : > { %1107 = vmatpush1.bf16.msra.mxu0 %v1106_v63 }
  0xf8   : > { %1125 = vmatpush3.bf16.msra.mxu1 %v1124_v16 }
  0xf9   : > { %635 = vmatmul.mubr.f32.vlgmr.msra.gmra.mrb[0].mxu0 %v1776_v2  ;;  %1126 = vmatprep.subr.bf16.mxu1 %v1473_v1 }
  0xfc   : > { %1128 = vmatpush3.bf16.msra.mxu1 %v1127_v20 }
  0xfd   : > { %1129 = vmatprep.subr.bf16.mxu1 %v1473_v1 }
 0x100   : > { %1131 = vmatpush3.bf16.msra.mxu1 %v1130_v22 }
 0x1cc   : > { %v636_v23 = vpop.f32.mrb[0].mxu0 }
 0x1cd   : > { %v909_v24 = vmul.f32 -1.442695, %v636_v23  ;;  %v638_v25 = vpop.f32.mrb[1].mxu0 }
 0x1ce   : > { %v656_v31 = vadd.f32 %v910_v30, %v638_v25 }
 0x1cf   : > { %1227 = vpow2.f32 %v909_v24 }
 0x1d0   : > { %v911_v1 = vmul.f32 -1.442695, %v656_v31 }
 0x1d9   : > { %v1228_v26 = vpop.eup %1227 }
 0x1da   : > { %v645_v27 = vadd.f32 1.0, %v1228_v26 }
 0x1dc   : > { %1229 = vrcp.f32 %v645_v27 }
 0x1dd   : > { %1231 = vpow2.f32 %v911_v1 }
 0x1e6   : > { %v1230_v28 = vpop.eup %1229 }
 0x1e7   : > { %v663_v29 = vmul.f32 %v1230_v28, %v1776_v2  ;;  %v1232_v32 = vpop.eup %1231 }
 0x1e8   : > { %v660_v33 = vadd.f32 1.0, %v1232_v32 }
 0x1e9   : > { %1018 = vmatmul.mubr.f32.vlgmr.msra.gmra.mrb[0].mxu1 %v663_v29 }
 0x1ea   : > { %1233 = vrcp.f32 %v660_v33 }
 0x1f4   : > { %v1234_v36 = vpop.eup %1233 }
 0x1f5   : > { %v752_v37 = vsub.f32 1.0, %v1234_v36 }
 0x1f7   : > { %v753_v40 = vmul.f32 %v752_v37, %v1776_v2 }
 0x2bc   : > { %v746_v34 = vpop.f32.mrb[0].mxu1 }
 0x2bd   : > { %1235 = vtanh.f32 %v746_v34  ;;  %v1019_v35 = vpop.f32.mrb[1].mxu1 }
 0x2c7   : > { %v1236_v38 = vpop.eup %1235 }
 0x2c8   : > { %v754_v39 = vmul.f32 %v1236_v38, %v1234_v36 }
 0x2ca   : > { %v755_v41 = vadd.f32 %v754_v39, %v753_v40 }
 0x2cc   : > { %756 = vst [vmem:[%s346_s8] sm:$0xff] %v755_v41 }
 0x2cd   : > { %1394 = shalt.err (!%p1391_p10)
}
 0x2ce   : > { %s1395_s2 = scalar_lea.hbm %s1795_s11, 128  ;;  %s1399_s29 = scalar_lea.hbm %s1845_s6, 256 }
 0x2cf   : > { %p1396_p13 = scmp.ne.s32.totalorder %s1795_s11, %s1395_s2  ;;  %p1400_p9 = scmp.lt.u32.totalorder %s1795_s11, %s1845_s6 }
 0x2d0   : > { %p1401_p3 = scmp.lt.u32.totalorder %s1399_s29, %s1395_s2  ;;  %p1403_p12 = scmp.lt.u32.totalorder %s1395_s2, %s1795_s11 }
 0x2d1   : > { %p1397_p5 = pnand %p1396_p13, %p1870_p2 }
 0x2d2   : > { %p1402_p7 = por %p1401_p3, %p1400_p9 }
 0x2d3   : > { %p1398_p11 = pneg %p1397_p5 }
 0x2d4   : > { %p1404_p1 = por %p1403_p12, %p1402_p7 }
 0x2d6   : > { %p1405_p4 = pnand %p1404_p1, %p1398_p11 }
 0x2d8   : > { %1408 = shalt.err (!%p1405_p4)
}
 0x2d9   : > { %1152 = dma.vmem_to_hbm [thread:$0]  (%p1870_p2), %s1797_s15, 128, %s1795_s11, %s758_s7  }
 0x2da PF: > { %s783_s27 = sand.u32 1, %s1447_s21   ;;  %p1871_p0 = scmp.ne.s32.totalorder %s1854_s28, 0 }
 0x2db   : > { %p1872_p8 = scmp.ge.s32.totalorder %s1459_s24, 2  ;;  %s784_s26 = scalar_lea.sflag [#allocation4], %s783_s27 }
 0x2dd   : > { %p1172_p6 = pnand %p1872_p8, %p1871_p0 }
 0x2df   : > { %1442 = dma.done.wait (!%p1172_p6), %s784_s26, 128  }
 0x2e0   : > { %1444 = vsyncadd (!%p1172_p6), %s784_s26, 4294967168  ;;  %p23_p10 = scmp.ge.s32.totalorder %s1639_s30, 4   ;;  %s1873_s21 = smov %s1451_s22 }
 0x2e1   : > { %s1874_s22 = smov %s1455_s23  ;;  %s1875_s23 = smov %s1649_s13 }
 0x2e2   : > { %s1876_s24 = smov %s1639_s30  ;;  %25 = sbr.rel (!%p23_p10) target bundleno = 12 (0xc), region = 114 }
 0x2e9   :  { %789 = vsyncpa [#allocation3], 1 }
 0x2ea   :  { %791 = vsyncpa [#allocation3 + $0x1], 1 }
 0x2eb   :  { %792 = vsyncpa [#allocation6], 1 }
 0x2ec   :  { %794 = vsyncpa [#allocation6 + $0x1], 1 }
 0x2ed   :  { %795 = vsyncpa [#allocation9], 1 }
 0x2ee   :  { %796 = vsyncpa [#allocation4], 1 }
 0x2ef   :  { %798 = vsyncpa [#allocation4 + $0x1], 1 }

// kernel: tpu_custom_call.1
= control target key start
LH: loop header
LB: loop body
LE: loop exit
PB: predicated region body
PF: predicated region fallthrough
CT: control target
= control target key end

     0   :  { %s1839_s0 = inlined_call_operand.hbm [shape: f32[16,128], index: 0, kind: input, shape index: {}]   ;;  %s1840_s1 = inlined_call_operand.hbm [shape: f32[16,128], index: 1, kind: input, shape index: {}]   ;;  %s1841_s2 = inlined_call_operand.hbm [shape: f32[128,384], index: 2, kind: input, shape index: {}]   ;;  %s1842_s3 = inlined_call_operand.hbm [shape: f32[128,256], index: 3, kind: input, shape index: {}]   ;;  %s1843_s4 = inlined_call_operand.hbm [shape: f32[128,128], index: 4, kind: input, shape index: {}]   ;;  %s1844_s5 = inlined_call_operand.vmem [shape: f32[1,128], index: 5, kind: input, shape index: {}]   ;;  %s1845_s6 = inlined_call_operand.hbm [shape: f32[16,128], index: 6, kind: output, shape index: {}]  }
   0x1   :  { %1850 = sst [smem:[#allocation17_spill]] %s1841_s2 }
   0x2   :  { %1851 = sst [smem:[#allocation18_spill]] %s1842_s3 }
   0x3   :  { %1852 = sst [smem:[#allocation19_spill]] %s1843_s4 }
   0x4   :  { %11 = vsyncpa [#allocation3], 0 }
   0x5   :  { %13 = vsyncpa [#allocation3 + $0x1], 0 }
   0x6   :  { %14 = vsyncpa [#allocation6], 0 }
   0x7   :  { %16 = vsyncpa [#allocation6 + $0x1], 0 }
   0x8   :  { %17 = vsyncpa [#allocation9], 0 }
   0x9   :  { %18 = vsyncpa [#allocation4], 0 }
   0xa   :  { %20 = vsyncpa [#allocation4 + $0x1], 0  ;;  %s1511_s21 = smov 0   ;;  %s1513_s22 = smov 0  }
   0xb   :  { %s1515_s23 = smov 0   ;;  %s1517_s24 = smov 0  }
   0xc LB: > { %s1532_s25 = sadd.s32 4294967295, %s1459_s24   ;;  %s892_s26 = sadd.s32 4294967294, %s1459_s24   ;;  %s1459_s24 = sphi %s1517_s24, %s1876_s24   ;;  %s1455_s23 = sphi %s1515_s23, %s1875_s23   ;;  %s1451_s22 = sphi %s1513_s22, %s1874_s22   ;;  %s1447_s21 = sphi %s1511_s21, %s1873_s21  }
   0xd   : > { %p46_p0 = scmp.ne.s32.totalorder %s1451_s22, %s1447_s21  ;;  %p1846_p1 = scmp.eq.s32.totalorder %s1532_s25, 0 }
   0xe   : > { %p186_p3 = scmp.eq.s32.totalorder %s892_s26, 1  ;;  %p893_p5 = scmp.ge.s32.totalorder %s1459_s24, 1 }
   0xf   : > { %p1541_p4 = por %p1846_p1, %p46_p0  ;;  %p193_p7 = scmp.lt.s32.totalorder %s1459_s24, 3 }
  0x10   : > { %p1546_p6 = por %p186_p3, %p46_p0  ;;  %s1461_s30 = smov [#allocation7]  }
  0x11   : > { %s1853_s27 = scalar_select %p1541_p4, 1, 0 }
  0x12   : > { %s1854_s28 = scalar_select %p1546_p6, 1, 0 }
  0x13   : > { %p1551_p8 = pnand %p893_p5, %p193_p7  ;;  %s205_s7 = sshll.u32 %s1461_s30, 4  ;;  %s1555_s7 = int_to_ptr.vmem [resolvable:$true] %s205_s7 }
  0x14   : > { %s1462_s9 = smov [#allocation8]   ;;  %s1857_s2 = sld [smem:[#allocation17_spill]] }
  0x15   : > { %s1855_s29 = scalar_select %p1551_p8, 1, 0 }
  0x16   : > { %p1154_p9 = pneg %p1551_p8  ;;  %s218_s10 = sshll.u32 %s1462_s9, 4  ;;  %s1566_s10 = int_to_ptr.vmem [resolvable:$true] %s218_s10 }
  0x18   : > { %p1562_p11 = pnand %p1154_p9, %p1846_p1 }
  0x1a   : > { %s1237_s13 = scalar_lea.hbm %s1857_s2, 6144  ;;  %p1576_p13 = pneg %p1562_p11 }
  0x1b   : > { %p1238_p12 = scmp.ne.s32.totalorder %s1857_s2, %s1237_s13  ;;  %p1244_p5 = scmp.lt.u32.totalorder %s1237_s13, %s1857_s2 }
  0x1d   : > { %p1240_p0 = pnand %p1576_p13, %p1238_p12 }
  0x1f   : > { %p1241_p3 = pneg %p1240_p0 }
  0x21   : > { %p1246_p7 = pnand %p1244_p5, %p1241_p3 }
  0x23   : > { %1249 = shalt.err (!%p1246_p7)
}
  0x24   : > { %s1250_s19 = scalar_lea.vmem %s1555_s7, 6144  ;;  %p1258_p2 = scmp.lt.s32.totalorder %s1555_s7, %s1555_s7 }
  0x25   : > { %p1251_p9 = scmp.ne.s32.totalorder %s1555_s7, %s1250_s19  ;;  %p1259_p6 = scmp.lt.s32.totalorder %s1250_s19, %s1250_s19 }
  0x27   : > { %p1253_p10 = pnand %p1251_p9, %p1576_p13  ;;  %p1260_p12 = por %p1259_p6, %p1258_p2 }
  0x29   : > { %p1254_p1 = pneg %p1253_p10 }
  0x2b   : > { %p1261_p0 = pnand %p1260_p12, %p1254_p1 }
  0x2d   : > { %1264 = shalt.err (!%p1261_p0)
}
  0x2e   : > { %s1463_s20 = smov 384   ;;  %s1464_s26 = smov 24  }
  0x2f   : > { %1157 = dma.hbm_to_vmem [thread:$0]  (!%p1562_p11), %s1857_s2, 6144, %s1555_s7, [#allocation6], %s1463_s20, %s1463_s20, %s1464_s26  }
  0x30   : > { %s1859_s3 = sld [smem:[#allocation18_spill]] }
  0x36   : > { %s1265_s13 = scalar_lea.hbm %s1859_s3, 4096 }
  0x37   : > { %p1266_p2 = scmp.ne.s32.totalorder %s1859_s3, %s1265_s13  ;;  %p1272_p10 = scmp.lt.u32.totalorder %s1265_s13, %s1859_s3 }
  0x39   : > { %p1268_p1 = pnand %p1266_p2, %p1576_p13 }
  0x3b   : > { %p1269_p6 = pneg %p1268_p1 }
  0x3d   : > { %p1274_p3 = pnand %p1272_p10, %p1269_p6 }
  0x3f   : > { %1277 = shalt.err (!%p1274_p3)
}
  0x40   : > { %s1278_s7 = scalar_lea.vmem %s1566_s10, 4096  ;;  %p1286_p12 = scmp.lt.s32.totalorder %s1566_s10, %s1566_s10 }
  0x41   : > { %p1279_p5 = scmp.ne.s32.totalorder %s1566_s10, %s1278_s7  ;;  %p1287_p0 = scmp.lt.s32.totalorder %s1278_s7, %s1278_s7 }
  0x43   : > { %p1281_p7 = pnand %p1279_p5, %p1576_p13  ;;  %p1288_p2 = por %p1287_p0, %p1286_p12 }
  0x45   : > { %p1282_p9 = pneg %p1281_p7 }
  0x47   : > { %p1289_p1 = pnand %p1288_p2, %p1282_p9 }
  0x49   : > { %1292 = shalt.err (!%p1289_p1)
}
  0x4a   : > { %s1465_s19 = smov 256   ;;  %s1466_s20 = smov 16  }
  0x4b   : > { %1160 = dma.hbm_to_vmem [thread:$0]  (!%p1562_p11), %s1859_s3, 4096, %s1566_s10, [#allocation9], %s1465_s19, %s1465_s19, %s1466_s20  }
  0x4c   : > { %s1467_s9 = smov [#allocation10]   ;;  %s1860_s4 = sld [smem:[#allocation19_spill]] }
  0x4d   : > { %s231_s11 = sshll.u32 %s1467_s9, 4  ;;  %s232_s11 = int_to_ptr.vmem [resolvable:$true] %s231_s11 }
  0x52   : > { %s1293_s14 = scalar_lea.hbm %s1860_s4, 2048 }
  0x53   : > { %p1294_p6 = scmp.ne.s32.totalorder %s1860_s4, %s1293_s14  ;;  %p1300_p5 = scmp.lt.u32.totalorder %s1293_s14, %s1860_s4 }
  0x55   : > { %p1296_p10 = pnand %p1294_p6, %p1576_p13 }
  0x57   : > { %p1297_p3 = pneg %p1296_p10 }
  0x59   : > { %p1302_p7 = pnand %p1300_p5, %p1297_p3 }
  0x5b   : > { %1305 = shalt.err (!%p1302_p7)
}
  0x5c   : > { %s1306_s10 = scalar_lea.vmem %s232_s11, 2048  ;;  %p1314_p2 = scmp.lt.s32.totalorder %s232_s11, %s232_s11 }
  0x5d   : > { %p1307_p9 = scmp.ne.s32.totalorder %s232_s11, %s1306_s10  ;;  %p1315_p1 = scmp.lt.s32.totalorder %s1306_s10, %s1306_s10 }
  0x5f   : > { %p1309_p12 = pnand %p1307_p9, %p1576_p13  ;;  %p1316_p4 = por %p1315_p1, %p1314_p2 }
  0x61   : > { %p1310_p0 = pneg %p1309_p12 }
  0x63   : > { %p1317_p8 = pnand %p1316_p4, %p1310_p0 }
  0x65   : > { %1320 = shalt.err (!%p1317_p8)
}
  0x66   : > { %s1468_s19 = smov 128   ;;  %s1469_s16 = smov 8  }
  0x67   : > { %1163 = dma.hbm_to_vmem [thread:$0]  (!%p1562_p11), %s1860_s4, 2048, %s232_s11, [#allocation9], %s1468_s19, %s1468_s19, %s1469_s16  }
  0x68   : > { %s1639_s30 = sadd.s32 1, %s1459_s24   ;;  %s33_s12 = sadd.s32 1, %s1455_s23 }
  0x69   : > { %s30_s9 = ssub.s32 %s1459_s24, %s1639_s30  ;;  %p40_p8 = scmp.ne.s32.totalorder %s1455_s23, %s1451_s22 }
  0x6a   : > { %p31_p4 = scmp.eq.s32.totalorder %s30_s9, 0  ;;  %p41_p13 = scmp.eq.s32.totalorder %s1459_s24, 0 }
  0x6b   : > { %p1178_p6 = scmp.lt.s32.totalorder %s1459_s24, 2  ;;  %p1861_p3 = scmp.eq.s32.totalorder %s1532_s25, 1 }
  0x6c   : > { %s1649_s13 = scalar_select %p31_p4, %s1455_s23, %s33_s12  }
  0x6d   : > { %p42_p10 = por %p41_p13, %p40_p8  ;;  %p1653_p5 = por %p1861_p3, %p40_p8 }
  0x6e   : > { %s248_s8 = sand.u32 1, %s1455_s23   ;;  %s899_s15 = sshll.u32 %s1459_s24, 7 }
  0x6f   : > { %s1862_s14 = scalar_select %p1653_p5, 1, 0 }
  0x70   : > { %s1659_s11 = sshll.u32 %s248_s8, 3  ;;  %s1664_s7 = scalar_lea.hbm %s1839_s0, %s899_s15 }
  0x71   : > { %s252_s10 = scalar_lea.vmem [#allocation2], %s1659_s11  ;;  %p1667_p11 = pnand %p1178_p6, %p42_p10 }
  0x72   : > { %s259_s19 = sshll.u32 %s252_s10, 4  ;;  %s1676_s9 = scalar_lea.hbm %s1840_s1, %s899_s15  ;;  %s1671_s19 = int_to_ptr.vmem [resolvable:$true] %s259_s19 }
  0x73   : > { %s249_s12 = scalar_lea.sflag [#allocation3], %s248_s8  ;;  %s1321_s17 = scalar_lea.hbm %s1664_s7, 128 }
  0x74   : > { %p1322_p7 = scmp.ne.s32.totalorder %s1664_s7, %s1321_s17  ;;  %p1323_p9 = pneg %p1667_p11 }
  0x75   : > { %s1326_s2 = scalar_lea.hbm %s1839_s0, 256  ;;  %p1327_p2 = scmp.lt.u32.totalorder %s1664_s7, %s1839_s0 }
  0x76   : > { %p1324_p12 = pnand %p1323_p9, %p1322_p7  ;;  %p1328_p1 = scmp.lt.u32.totalorder %s1326_s2, %s1321_s17 }
  0x77   : > { %p1330_p8 = scmp.lt.u32.totalorder %s1321_s17, %s1664_s7 }
  0x78   : > { %p1325_p0 = pneg %p1324_p12  ;;  %p1329_p4 = por %p1328_p1, %p1327_p2 }
  0x7a   : > { %p1331_p13 = por %p1330_p8, %p1329_p4 }
  0x7c   : > { %p1332_p6 = pnand %p1331_p13, %p1325_p0 }
  0x7e   : > { %1335 = shalt.err (!%p1332_p6)
}
  0x7f   : > { %s1336_s8 = scalar_lea.vmem %s1671_s19, 128  ;;  %s1470_s15 = smov [#allocation2]  }
  0x80   : > { %p1337_p10 = scmp.ne.s32.totalorder %s1671_s19, %s1336_s8  ;;  %s1341_s20 = sshll.u32 %s1470_s15, 4  ;;  %s1342_s20 = int_to_ptr.vmem [resolvable:$false] %s1341_s20 }
  0x81   : > { %s1343_s3 = scalar_lea.vmem %s1342_s20, 256  ;;  %p1344_p12 = scmp.lt.s32.totalorder %s1671_s19, %s1342_s20 }
  0x82   : > { %p1339_p3 = pnand %p1337_p10, %p1323_p9  ;;  %p1345_p2 = scmp.lt.s32.totalorder %s1343_s3, %s1336_s8 }
  0x84   : > { %p1340_p7 = pneg %p1339_p3  ;;  %p1346_p1 = por %p1345_p2, %p1344_p12 }
  0x86   : > { %p1347_p4 = pnand %p1346_p1, %p1340_p7 }
  0x88   : > { %1350 = shalt.err (!%p1347_p4)
}
  0x89   : > { %1167 = dma.hbm_to_vmem [thread:$0]  (!%p1667_p11), %s1664_s7, 128, %s1671_s19, %s249_s12  }
  0x8a   : > { %s266_s2 = sand.u32 1, %s1459_s24   ;;  %s270_s4 = scalar_lea.vmem [#allocation5], %s1659_s11 }
  0x8b   : > { %s277_s26 = sshll.u32 %s270_s4, 4  ;;  %s267_s17 = scalar_lea.sflag [#allocation6], %s266_s2  ;;  %s278_s26 = int_to_ptr.vmem [resolvable:$true] %s277_s26 }
  0x8c   : > { %s1351_s18 = scalar_lea.hbm %s1676_s9, 128  ;;  %s1356_s15 = scalar_lea.hbm %s1840_s1, 256 }
  0x8d   : > { %p1352_p0 = scmp.ne.s32.totalorder %s1676_s9, %s1351_s18  ;;  %p1357_p6 = scmp.lt.u32.totalorder %s1676_s9, %s1840_s1 }
  0x8e   : > { %p1358_p10 = scmp.lt.u32.totalorder %s1356_s15, %s1351_s18  ;;  %p1360_p7 = scmp.lt.u32.totalorder %s1351_s18, %s1676_s9 }
  0x8f   : > { %p1354_p8 = pnand %p1352_p0, %p1323_p9 }
  0x90   : > { %p1359_p3 = por %p1358_p10, %p1357_p6 }
  0x91   : > { %p1355_p13 = pneg %p1354_p8 }
  0x92   : > { %p1361_p12 = por %p1360_p7, %p1359_p3 }
  0x94   : > { %p1362_p2 = pnand %p1361_p12, %p1355_p13 }
  0x96   : > { %1365 = shalt.err (!%p1362_p2)
}
  0x97   : > { %s1366_s11 = scalar_lea.vmem %s278_s26, 128  ;;  %s1471_s7 = smov [#allocation5]  }
  0x98   : > { %p1367_p1 = scmp.ne.s32.totalorder %s278_s26, %s1366_s11  ;;  %s1371_s19 = sshll.u32 %s1471_s7, 4  ;;  %s1372_s19 = int_to_ptr.vmem [resolvable:$false] %s1371_s19 }
  0x99   : > { %s1373_s12 = scalar_lea.vmem %s1372_s19, 256  ;;  %p1374_p8 = scmp.lt.s32.totalorder %s278_s26, %s1372_s19 }
  0x9a   : > { %p1369_p4 = pnand %p1367_p1, %p1323_p9  ;;  %p1375_p5 = scmp.lt.s32.totalorder %s1373_s12, %s1366_s11 }
  0x9c   : > { %p1370_p0 = pneg %p1369_p4  ;;  %p1376_p6 = por %p1375_p5, %p1374_p8 }
  0x9e   : > { %p1377_p10 = pnand %p1376_p6, %p1370_p0 }
  0xa0   : > { %1380 = shalt.err (!%p1377_p10)
}
  0xa1   : > { %1170 = dma.hbm_to_vmem [thread:$0]  (!%p1667_p11), %s1676_s9, 128, %s278_s26, %s267_s17  }
  0xa2   : > { %p1864_p13 = scmp.ne.s32.totalorder %s1855_s29, 0 }
  0xa3   : > { %s1727_s2 = sand.u32 (!%p1864_p13), 1, %s1451_s22   ;;  %p1865_p5 = scmp.ne.s32.totalorder (!%p1864_p13), %s1853_s27, 0 }
  0xa4   : > { %286 = sbr.rel (%p1864_p13) target bundleno = 730 (0x2da), region = 44  ;;  %s1730_s4 = sshll.u32 (!%p1864_p13), %s1727_s2, 3 }
  0xa5   : > { %s289_s18 = scalar_lea.sflag (!%p1864_p13), [#allocation3], %s1727_s2  ;;  %s292_s10 = scalar_lea.vmem (!%p1864_p13), [#allocation2], %s1730_s4 }
  0xab   : > { %1426 = dma.done.wait (%p1865_p5), %s289_s18, 128  }
  0xac   : > { %1428 = vsyncadd (%p1865_p5), %s289_s18, 4294967168  ;;  %s297_s29 = sand.u32 1, %s1532_s25   ;;  %s301_s9 = scalar_lea.vmem [#allocation5], %s1730_s4 }
  0xad   : > { %s298_s16 = scalar_lea.sflag [#allocation6], %s297_s29 }
  0xae   : > { %1430 = dma.done.wait (%p1865_p5), %s298_s16, 128  }
  0xaf   : > { %1432 = vsyncadd (%p1865_p5), %s298_s16, 4294967168  ;;  %p1866_p11 = scmp.eq.s32.totalorder %s1532_s25, 0 }
  0xb1   : > { %1434 = dma.done.wait (%p1866_p11), [#allocation6], 6144   ;;  %p1867_p9 = pmov %p1866_p11 }
  0xb3   : > { %1436 = vsyncadd (%p1867_p9), [#allocation6], 4294961152  ;;  %p1868_p3 = pmov %p1867_p9 }
  0xb5   : > { %1438 = dma.done.wait (%p1868_p3), [#allocation9], 6144   ;;  %p1869_p7 = pmov %p1868_p3 }
  0xb6   : > { %v1472_v0 = vmov 0.0   ;;  %v1473_v1 = vmov 0.0|0.0   ;;  %vm1474_vm0 = vmmov 0   ;;  %v350_v2 = vld [vmem:[#allocation7 + $0x8] sm:$0xff]  ;;  %v353_v3 = vld [vmem:[#allocation7 + $0x20] sm:$0xff]  ;;  %v352_v6 = vld [vmem:[#allocation7 + $0x18] sm:$0xff] }
  0xb7   : > { %1440 = vsyncadd (%p1869_p7), [#allocation9], 4294961152  ;;  %461 = vmatprep.mubr.f32.mxu0 %v1472_v0  ;;  %1052 = vmatprep.subr.bf16.mxu1 %v1473_v1  ;;  %v349_v4 = vld [vmem:[#allocation7] sm:$0xff]  ;;  %v1020_v5 = vpack.c.bf16 %v353_v3, %v350_v2  ;;  %v356_v7 = vld [vmem:[#allocation7 + $0x38] sm:$0xff]  ;;  %s913_s17 = sshll.u32 %s1532_s25, 7  ;;  %s346_s8 = scalar_lea.vmem [#allocation11], %s1730_s4 }
  0xb8   : > { %982 = vmatprep.mubr.msk.f32.mxu1 %vm1474_vm0, %v1472_v0  ;;  %v359_v8 = vld [vmem:[#allocation7 + $0x50] sm:$0xff]  ;;  %v1022_v9 = vpack.c.bf16 %v352_v6, %v349_v4  ;;  %v358_v12 = vld [vmem:[#allocation7 + $0x48] sm:$0xff]  ;;  %v365_v14 = vld [vmem:[#allocation7 + $0x80] sm:$0xff]  ;;  %s771_s15 = sshll.u32 %s346_s8, 4  ;;  %s1795_s11 = scalar_lea.hbm %s1845_s6, %s913_s17  ;;  %s1797_s15 = int_to_ptr.vmem [resolvable:$true] %s771_s15 }
  0xb9   : > { %v1024_v10 = vpack.c.bf16 %v359_v8, %v356_v7  ;;  %v355_v11 = vld [vmem:[#allocation7 + $0x30] sm:$0xff]  ;;  %v362_v13 = vld [vmem:[#allocation7 + $0x68] sm:$0xff]  ;;  %1021 = vmatprep.subr.bf16.mxu0 %v1020_v5  ;;  %v361_v17 = vld [vmem:[#allocation7 + $0x60] sm:$0xff]  ;;  %s758_s7 = scalar_lea.sflag [#allocation4], %s1727_s2  ;;  %s1381_s19 = scalar_lea.vmem %s1797_s15, 128 }
  0xba   : > { %1023 = vmatpush1.bf16.msra.mxu0 %v1022_v9  ;;  %v1026_v15 = vpack.c.bf16 %v358_v12, %v355_v11  ;;  %v1028_v16 = vpack.c.bf16 %v365_v14, %v362_v13  ;;  %v364_v18 = vld [vmem:[#allocation7 + $0x78] sm:$0xff]  ;;  %v371_v20 = vld [vmem:[#allocation7 + $0xb0] sm:$0xff]  ;;  %v370_v24 = vld [vmem:[#allocation7 + $0xa8] sm:$0xff]  ;;  %p1382_p12 = scmp.ne.s32.totalorder %s1797_s15, %s1381_s19  ;;  %p1870_p2 = scmp.ne.s32.totalorder %s1862_s14, 0 }
  0xbb   : > { %1025 = vmatprep.subr.bf16.mxu0 %v1024_v10  ;;  %v368_v19 = vld [vmem:[#allocation7 + $0x98] sm:$0xff]  ;;  %v1030_v21 = vpack.c.bf16 %v364_v18, %v361_v17  ;;  %v367_v23 = vld [vmem:[#allocation7 + $0x90] sm:$0xff]  ;;  %v374_v25 = vld [vmem:[#allocation7 + $0xc8] sm:$0xff]  ;;  %s1475_s25 = smov [#allocation11]  }
  0xbc   : > { %v1032_v22 = vpack.c.bf16 %v371_v20, %v368_v19  ;;  %v377_v26 = vld [vmem:[#allocation7 + $0xe0] sm:$0xff]  ;;  %v1034_v27 = vpack.c.bf16 %v370_v24, %v367_v23  ;;  %v376_v30 = vld [vmem:[#allocation7 + $0xd8] sm:$0xff]  ;;  %v383_v32 = vld [vmem:[#allocation7 + $0x110] sm:$0xff]  ;;  %p1383_p1 = pnand %p1382_p12, %p1870_p2  ;;  %s1385_s12 = sshll.u32 %s1475_s25, 4  ;;  %s1386_s12 = int_to_ptr.vmem [resolvable:$false] %s1385_s12 }
  0xbd   : > { %v1036_v28 = vpack.c.bf16 %v377_v26, %v374_v25  ;;  %v373_v29 = vld [vmem:[#allocation7 + $0xc0] sm:$0xff]  ;;  %v380_v31 = vld [vmem:[#allocation7 + $0xf8] sm:$0xff]  ;;  %v379_v35 = vld [vmem:[#allocation7 + $0xf0] sm:$0xff]  ;;  %s1387_s4 = scalar_lea.vmem %s1386_s12, 256  ;;  %p1388_p0 = scmp.lt.s32.totalorder %s1797_s15, %s1386_s12 }
  0xbe   : > { %1027 = vmatpush1.bf16.msra.mxu0 %v1026_v15  ;;  %v1038_v33 = vpack.c.bf16 %v376_v30, %v373_v29  ;;  %v1040_v34 = vpack.c.bf16 %v383_v32, %v380_v31  ;;  %v382_v36 = vld [vmem:[#allocation7 + $0x108] sm:$0xff]  ;;  %v389_v38 = vld [vmem:[#allocation7 + $0x140] sm:$0xff]  ;;  %v388_v42 = vld [vmem:[#allocation7 + $0x138] sm:$0xff]  ;;  %p1384_p4 = pneg %p1383_p1  ;;  %p1389_p8 = scmp.lt.s32.totalorder %s1387_s4, %s1381_s19 }
  0xbf   : > { %1029 = vmatprep.subr.bf16.mxu0 %v1028_v16  ;;  %v386_v37 = vld [vmem:[#allocation7 + $0x128] sm:$0xff]  ;;  %v1042_v39 = vpack.c.bf16 %v382_v36, %v379_v35  ;;  %v385_v40 = vld [vmem:[#allocation7 + $0x120] sm:$0xff]  ;;  %v392_v43 = vld [vmem:[#allocation7 + $0x158] sm:$0xff] }
  0xc0   : > { %v1044_v41 = vpack.c.bf16 %v389_v38, %v386_v37  ;;  %v395_v44 = vld [vmem:[#allocation7 + $0x170] sm:$0xff]  ;;  %v354_v46 = vld [vmem:[#allocation7 + $0x28] sm:$0xff]  ;;  %v357_v47 = vld [vmem:[#allocation7 + $0x40] sm:$0xff]  ;;  %v1046_v50 = vpack.c.bf16 %v388_v42, %v385_v40  ;;  %p1390_p6 = por %p1389_p8, %p1388_p0 }
  0xc1   : > { %v351_v45 = vld [vmem:[#allocation7 + $0x10] sm:$0xff]  ;;  %v360_v49 = vld [vmem:[#allocation7 + $0x58] sm:$0xff]  ;;  %v1048_v51 = vpack.c.bf16 %v395_v44, %v392_v43  ;;  %v394_v53 = vld [vmem:[#allocation7 + $0x168] sm:$0xff] }
  0xc2   : > { %1031 = vmatpush1.bf16.msra.mxu0 %v1030_v21  ;;  %v1053_v48 = vpack.c.bf16 %v354_v46, %v351_v45  ;;  %v391_v52 = vld [vmem:[#allocation7 + $0x150] sm:$0xff]  ;;  %v539_v54 = vld [vmem:[#allocation8 + $0x8] sm:$0xff]  ;;  %v1056_v55 = vpack.c.bf16 %v360_v49, %v357_v47  ;;  %v541_v56 = vld [vmem:[#allocation8 + $0x18] sm:$0xff]  ;;  %p1391_p10 = pnand %p1390_p6, %p1384_p4 }
  0xc3   : > { %1033 = vmatprep.subr.bf16.mxu0 %v1032_v22  ;;  %v363_v57 = vld [vmem:[#allocation7 + $0x70] sm:$0xff]  ;;  %v366_v58 = vld [vmem:[#allocation7 + $0x88] sm:$0xff]  ;;  %v1050_v59 = vpack.c.bf16 %v394_v53, %v391_v52  ;;  %v1076_v60 = vpack.c.bf16 %v541_v56, %v539_v54  ;;  %v538_v61 = vld [vmem:[#allocation8] sm:$0xff] }
  0xc4   : > { %1054 = vmatpush3.bf16.msra.mxu1 %v1053_v48  ;;  %v540_v62 = vld [vmem:[#allocation8 + $0x10] sm:$0xff]  ;;  %v543_v63 = vld [vmem:[#allocation8 + $0x28] sm:$0xff]  ;;  %v1059_v2 = vpack.c.bf16 %v366_v58, %v363_v57  ;;  %v545_v3 = vld [vmem:[#allocation8 + $0x38] sm:$0xff] }
  0xc5   : > { %1055 = vmatprep.subr.bf16.mxu1 %v1473_v1  ;;  %v369_v4 = vld [vmem:[#allocation7 + $0xa0] sm:$0xff]  ;;  %v372_v5 = vld [vmem:[#allocation7 + $0xb8] sm:$0xff]  ;;  %v1078_v7 = vpack.c.bf16 %v540_v62, %v538_v61  ;;  %v1080_v8 = vpack.c.bf16 %v545_v3, %v543_v63  ;;  %v544_v10 = vld [vmem:[#allocation8 + $0x30] sm:$0xff] }
  0xc6   : > { %1035 = vmatpush1.bf16.msra.mxu0 %v1034_v27  ;;  %v1760_v6 = vld [vmem:[%s301_s9] sm:$0xff]  ;;  %v542_v9 = vld [vmem:[#allocation8 + $0x20] sm:$0xff]  ;;  %v547_v11 = vld [vmem:[#allocation8 + $0x48] sm:$0xff]  ;;  %v1062_v12 = vpack.c.bf16 %v372_v5, %v369_v4 }
  0xc7   : > { %1037 = vmatprep.subr.bf16.mxu0 %v1036_v28  ;;  %v549_v13 = vld [vmem:[#allocation8 + $0x58] sm:$0xff]  ;;  %v375_v14 = vld [vmem:[#allocation7 + $0xd0] sm:$0xff]  ;;  %v378_v15 = vld [vmem:[#allocation7 + $0xe8] sm:$0xff]  ;;  %v1082_v16 = vpack.c.bf16 %v544_v10, %v542_v9 }
  0xc8   : > { %1057 = vmatpush3.bf16.msra.mxu1 %v1056_v55  ;;  %v1084_v17 = vpack.c.bf16 %v549_v13, %v547_v11  ;;  %v546_v18 = vld [vmem:[#allocation8 + $0x40] sm:$0xff]  ;;  %v548_v19 = vld [vmem:[#allocation8 + $0x50] sm:$0xff]  ;;  %v551_v20 = vld [vmem:[#allocation8 + $0x68] sm:$0xff]  ;;  %v1065_v21 = vpack.c.bf16 %v378_v15, %v375_v14 }
  0xc9   : > { %1058 = vmatprep.subr.bf16.mxu1 %v1473_v1  ;;  %v553_v22 = vld [vmem:[#allocation8 + $0x78] sm:$0xff]  ;;  %v381_v23 = vld [vmem:[#allocation7 + $0x100] sm:$0xff]  ;;  %v1086_v25 = vpack.c.bf16 %v548_v19, %v546_v18  ;;  %v552_v28 = vld [vmem:[#allocation8 + $0x70] sm:$0xff] }
  0xca   : > { %1039 = vmatpush1.bf16.msra.mxu0 %v1038_v33  ;;  %v384_v24 = vld [vmem:[#allocation7 + $0x118] sm:$0xff]  ;;  %v1088_v26 = vpack.c.bf16 %v553_v22, %v551_v20  ;;  %v550_v27 = vld [vmem:[#allocation8 + $0x60] sm:$0xff]  ;;  %v555_v29 = vld [vmem:[#allocation8 + $0x88] sm:$0xff] }
  0xcb   : > { %1041 = vmatprep.subr.bf16.mxu0 %v1040_v34  ;;  %v1068_v30 = vpack.c.bf16 %v384_v24, %v381_v23  ;;  %v557_v31 = vld [vmem:[#allocation8 + $0x98] sm:$0xff]  ;;  %v387_v32 = vld [vmem:[#allocation7 + $0x130] sm:$0xff]  ;;  %v390_v33 = vld [vmem:[#allocation7 + $0x148] sm:$0xff]  ;;  %v1090_v34 = vpack.c.bf16 %v552_v28, %v550_v27 }
  0xcc   : > { %1060 = vmatpush3.bf16.msra.mxu1 %v1059_v2  ;;  %v1092_v35 = vpack.c.bf16 %v557_v31, %v555_v29  ;;  %v554_v36 = vld [vmem:[#allocation8 + $0x80] sm:$0xff]  ;;  %v556_v37 = vld [vmem:[#allocation8 + $0x90] sm:$0xff]  ;;  %v559_v38 = vld [vmem:[#allocation8 + $0xa8] sm:$0xff] }
  0xcd   : > { %1061 = vmatprep.subr.bf16.mxu1 %v1473_v1  ;;  %v561_v40 = vld [vmem:[#allocation8 + $0xb8] sm:$0xff]  ;;  %v1094_v43 = vpack.c.bf16 %v556_v37, %v554_v36  ;;  %v558_v45 = vld [vmem:[#allocation8 + $0xa0] sm:$0xff]  ;;  %v560_v46 = vld [vmem:[#allocation8 + $0xb0] sm:$0xff] }
  0xce   : > { %1043 = vmatpush1.bf16.msra.mxu0 %v1042_v39  ;;  %v1071_v39 = vpack.c.bf16 %v390_v33, %v387_v32  ;;  %v396_v42 = vld [vmem:[#allocation7 + $0x178] sm:$0xff]  ;;  %v1096_v44 = vpack.c.bf16 %v561_v40, %v559_v38  ;;  %v563_v47 = vld [vmem:[#allocation8 + $0xc8] sm:$0xff]  ;;  %v1098_v52 = vpack.c.bf16 %v560_v46, %v558_v45  ;;  %v562_v54 = vld [vmem:[#allocation8 + $0xc0] sm:$0xff] }
  0xcf   : > { %1045 = vmatprep.subr.bf16.mxu0 %v1044_v41  ;;  %v393_v41 = vld [vmem:[#allocation7 + $0x160] sm:$0xff]  ;;  %v565_v49 = vld [vmem:[#allocation8 + $0xd8] sm:$0xff]  ;;  %v564_v55 = vld [vmem:[#allocation8 + $0xd0] sm:$0xff] }
  0xd0   : > { %1063 = vmatpush3.bf16.msra.mxu1 %v1062_v12  ;;  %v1074_v48 = vpack.c.bf16 %v396_v42, %v393_v41  ;;  %v1100_v53 = vpack.c.bf16 %v565_v49, %v563_v47  ;;  %v567_v57 = vld [vmem:[#allocation8 + $0xe8] sm:$0xff]  ;;  %v569_v58 = vld [vmem:[#allocation8 + $0xf8] sm:$0xff]  ;;  %v566_v61 = vld [vmem:[#allocation8 + $0xe0] sm:$0xff] }
  0xd1   : > { %1064 = vmatprep.subr.bf16.mxu1 %v1473_v1  ;;  %v568_v62 = vld [vmem:[#allocation8 + $0xf0] sm:$0xff]  ;;  %v1776_v2 = vld [vmem:[%s292_s10] sm:$0xff]  ;;  %v667_v4 = vld [vmem:[#allocation10 + $0x18] sm:$0xff] }
  0xd2   : > { %1047 = vmatpush1.bf16.msra.mxu0 %v1046_v50  ;;  %v664_v50 = vld [vmem:[#allocation10] sm:$0xff]  ;;  %v1106_v63 = vpack.c.bf16 %v568_v62, %v566_v61  ;;  %v666_v3 = vld [vmem:[#allocation10 + $0x10] sm:$0xff]  ;;  %v671_v9 = vld [vmem:[#allocation10 + $0x38] sm:$0xff] }
  0xd3   : > { %1049 = vmatprep.subr.bf16.mxu0 %v1048_v51  ;;  %v665_v51 = vld [vmem:[#allocation10 + $0x8] sm:$0xff]  ;;  %v1112_v5 = vpack.c.bf16 %v667_v4, %v666_v3  ;;  %v672_v11 = vld [vmem:[#allocation10 + $0x40] sm:$0xff]  ;;  %v674_v14 = vld [vmem:[#allocation10 + $0x50] sm:$0xff] }
  0xd4   : > { %1066 = vmatpush3.bf16.msra.mxu1 %v1065_v21  ;;  %v1109_v56 = vpack.c.bf16 %v665_v51, %v664_v50  ;;  %v673_v12 = vld [vmem:[#allocation10 + $0x48] sm:$0xff]  ;;  %v675_v15 = vld [vmem:[#allocation10 + $0x58] sm:$0xff]  ;;  %v678_v19 = vld [vmem:[#allocation10 + $0x70] sm:$0xff] }
  0xd5   : > { %1067 = vmatprep.subr.bf16.mxu1 %v1473_v1  ;;  %v1121_v13 = vpack.c.bf16 %v673_v12, %v672_v11  ;;  %v677_v18 = vld [vmem:[#allocation10 + $0x68] sm:$0xff]  ;;  %v679_v21 = vld [vmem:[#allocation10 + $0x78] sm:$0xff] }
  0xd6   : > { %1051 = vmatpush1.bf16.msra.mxu0 %v1050_v59  ;;  %v1102_v59 = vpack.c.bf16 %v564_v55, %v562_v54  ;;  %v1130_v22 = vpack.c.bf16 %v679_v21, %v678_v19 }
  0xd7   : > { %1077 = vmatprep.subr.bf16.mxu0 %v1076_v60  ;;  %v1104_v60 = vpack.c.bf16 %v569_v58, %v567_v57 }
  0xd8   : > { %1069 = vmatpush3.bf16.msra.mxu1 %v1068_v30  ;;  %v910_v30 = vld [vmem:[%s1844_s5] ss:$0 sm:$0xff] }
  0xd9   : > { %462 = vmatmul.mubr.f32.vlgmr.msra.gmra.mrb[0].mxu0 %v1760_v6  ;;  %1070 = vmatprep.subr.bf16.mxu1 %v1473_v1 }
  0xda   : > { %1079 = vmatpush1.bf16.msra.mxu0 %v1078_v7  ;;  %634 = vmatprep.mubr.f32.mxu0 %v1472_v0  ;;  %v669_v7 = vld [vmem:[#allocation10 + $0x28] sm:$0xff] }
  0xdb   : > { %1081 = vmatprep.subr.bf16.mxu0 %v1080_v8 }
  0xdc   : > { %1072 = vmatpush3.bf16.msra.mxu1 %v1071_v39 }
  0xdd   : > { %1073 = vmatprep.subr.bf16.mxu1 %v1473_v1 }
  0xde   : > { %1083 = vmatpush1.bf16.msra.mxu0 %v1082_v16  ;;  %v1124_v16 = vpack.c.bf16 %v675_v15, %v674_v14 }
  0xdf   : > { %1085 = vmatprep.subr.bf16.mxu0 %v1084_v17  ;;  %v676_v17 = vld [vmem:[#allocation10 + $0x60] sm:$0xff] }
  0xe0   : > { %1075 = vmatpush3.bf16.msra.mxu1 %v1074_v48  ;;  %v1127_v20 = vpack.c.bf16 %v677_v18, %v676_v17 }
  0xe1   : > { %1108 = vmatprep.subr.bf16.mxu1 %v1473_v1 }
  0xe2   : > { %1087 = vmatpush1.bf16.msra.mxu0 %v1086_v25 }
  0xe3   : > { %1089 = vmatprep.subr.bf16.mxu0 %v1088_v26  ;;  %983 = vmatmul.mubr.f32.vlgmr.msra.gmra.mrb[0].mxu1 %v1760_v6  ;;  %v668_v6 = vld [vmem:[#allocation10 + $0x20] sm:$0xff] }
  0xe4   : > { %1110 = vmatpush3.bf16.msra.mxu1 %v1109_v56  ;;  %1017 = vmatprep.mubr.msk.f32.mxu1 %vm1474_vm0, %v1472_v0  ;;  %v1115_v8 = vpack.c.bf16 %v669_v7, %v668_v6  ;;  %v670_v0 = vld [vmem:[#allocation10 + $0x30] sm:$0xff] }
  0xe5   : > { %1111 = vmatprep.subr.bf16.mxu1 %v1473_v1  ;;  %v1118_v10 = vpack.c.bf16 %v671_v9, %v670_v0 }
  0xe6   : > { %1091 = vmatpush1.bf16.msra.mxu0 %v1090_v34 }
  0xe7   : > { %1093 = vmatprep.subr.bf16.mxu0 %v1092_v35 }
  0xe8   : > { %1113 = vmatpush3.bf16.msra.mxu1 %v1112_v5 }
  0xe9   : > { %1114 = vmatprep.subr.bf16.mxu1 %v1473_v1 }
  0xea   : > { %1095 = vmatpush1.bf16.msra.mxu0 %v1094_v43 }
  0xeb   : > { %1097 = vmatprep.subr.bf16.mxu0 %v1096_v44 }
  0xec   : > { %1116 = vmatpush3.bf16.msra.mxu1 %v1115_v8 }
  0xed   : > { %1117 = vmatprep.subr.bf16.mxu1 %v1473_v1 }
  0xee   : > { %1099 = vmatpush1.bf16.msra.mxu0 %v1098_v52 }
  0xef   : > { %1101 = vmatprep.subr.bf16.mxu0 %v1100_v53 }
  0xf0   : > { %1119 = vmatpush3.bf16.msra.mxu1 %v1118_v10 }
  0xf1   : > { %1120 = vmatprep.subr.bf16.mxu1 %v1473_v1 }
  0xf2   : > { %1103 = vmatpush1.bf16.msra.mxu0 %v1102_v59 }
  0xf3   : > { %1105 = vmatprep.subr.bf16.mxu0 %v1104_v60 }
  0xf4   : > { %1122 = vmatpush3.bf16.msra.mxu1 %v1121_v13 }
  0xf5   : > { %1123 = vmatprep.subr.bf16.mxu1 %v1473_v1 }
  0xf6   : > { %1107 = vmatpush1.bf16.msra.mxu0 %v1106_v63 }
  0xf8   : > { %1125 = vmatpush3.bf16.msra.mxu1 %v1124_v16 }
  0xf9   : > { %635 = vmatmul.mubr.f32.vlgmr.msra.gmra.mrb[0].mxu0 %v1776_v2  ;;  %1126 = vmatprep.subr.bf16.mxu1 %v1473_v1 }
  0xfc   : > { %1128 = vmatpush3.bf16.msra.mxu1 %v1127_v20 }
  0xfd   : > { %1129 = vmatprep.subr.bf16.mxu1 %v1473_v1 }
 0x100   : > { %1131 = vmatpush3.bf16.msra.mxu1 %v1130_v22 }
 0x1cc   : > { %v636_v23 = vpop.f32.mrb[0].mxu0 }
 0x1cd   : > { %v909_v24 = vmul.f32 -1.442695, %v636_v23  ;;  %v638_v25 = vpop.f32.mrb[1].mxu0 }
 0x1ce   : > { %v656_v31 = vadd.f32 %v910_v30, %v638_v25 }
 0x1cf   : > { %1227 = vpow2.f32 %v909_v24 }
 0x1d0   : > { %v911_v1 = vmul.f32 -1.442695, %v656_v31 }
 0x1d9   : > { %v1228_v26 = vpop.eup %1227 }
 0x1da   : > { %v645_v27 = vadd.f32 1.0, %v1228_v26 }
 0x1dc   : > { %1229 = vrcp.f32 %v645_v27 }
 0x1dd   : > { %1231 = vpow2.f32 %v911_v1 }
 0x1e6   : > { %v1230_v28 = vpop.eup %1229 }
 0x1e7   : > { %v663_v29 = vmul.f32 %v1230_v28, %v1776_v2  ;;  %v1232_v32 = vpop.eup %1231 }
 0x1e8   : > { %v660_v33 = vadd.f32 1.0, %v1232_v32 }
 0x1e9   : > { %1018 = vmatmul.mubr.f32.vlgmr.msra.gmra.mrb[0].mxu1 %v663_v29 }
 0x1ea   : > { %1233 = vrcp.f32 %v660_v33 }
 0x1f4   : > { %v1234_v36 = vpop.eup %1233 }
 0x1f5   : > { %v752_v37 = vsub.f32 1.0, %v1234_v36 }
 0x1f7   : > { %v753_v40 = vmul.f32 %v752_v37, %v1776_v2 }
 0x2bc   : > { %v746_v34 = vpop.f32.mrb[0].mxu1 }
 0x2bd   : > { %1235 = vtanh.f32 %v746_v34  ;;  %v1019_v35 = vpop.f32.mrb[1].mxu1 }
 0x2c7   : > { %v1236_v38 = vpop.eup %1235 }
 0x2c8   : > { %v754_v39 = vmul.f32 %v1236_v38, %v1234_v36 }
 0x2ca   : > { %v755_v41 = vadd.f32 %v754_v39, %v753_v40 }
 0x2cc   : > { %756 = vst [vmem:[%s346_s8] sm:$0xff] %v755_v41 }
 0x2cd   : > { %1394 = shalt.err (!%p1391_p10)
}
 0x2ce   : > { %s1395_s2 = scalar_lea.hbm %s1795_s11, 128  ;;  %s1399_s29 = scalar_lea.hbm %s1845_s6, 256 }
 0x2cf   : > { %p1396_p13 = scmp.ne.s32.totalorder %s1795_s11, %s1395_s2  ;;  %p1400_p9 = scmp.lt.u32.totalorder %s1795_s11, %s1845_s6 }
 0x2d0   : > { %p1401_p3 = scmp.lt.u32.totalorder %s1399_s29, %s1395_s2  ;;  %p1403_p12 = scmp.lt.u32.totalorder %s1395_s2, %s1795_s11 }
 0x2d1   : > { %p1397_p5 = pnand %p1396_p13, %p1870_p2 }
 0x2d2   : > { %p1402_p7 = por %p1401_p3, %p1400_p9 }
 0x2d3   : > { %p1398_p11 = pneg %p1397_p5 }
 0x2d4   : > { %p1404_p1 = por %p1403_p12, %p1402_p7 }
 0x2d6   : > { %p1405_p4 = pnand %p1404_p1, %p1398_p11 }
 0x2d8   : > { %1408 = shalt.err (!%p1405_p4)
}
 0x2d9   : > { %1152 = dma.vmem_to_hbm [thread:$0]  (%p1870_p2), %s1797_s15, 128, %s1795_s11, %s758_s7  }
 0x2da PF: > { %s783_s27 = sand.u32 1, %s1447_s21   ;;  %p1871_p0 = scmp.ne.s32.totalorder %s1854_s28, 0 }
 0x2db   : > { %p1872_p8 = scmp.ge.s32.totalorder %s1459_s24, 2  ;;  %s784_s26 = scalar_lea.sflag [#allocation4], %s783_s27 }
 0x2dd   : > { %p1172_p6 = pnand %p1872_p8, %p1871_p0 }
 0x2df   : > { %1442 = dma.done.wait (!%p1172_p6), %s784_s26, 128  }
 0x2e0   : > { %1444 = vsyncadd (!%p1172_p6), %s784_s26, 4294967168  ;;  %p23_p10 = scmp.ge.s32.totalorder %s1639_s30, 4   ;;  %s1873_s21 = smov %s1451_s22 }
 0x2e1   : > { %s1874_s22 = smov %s1455_s23  ;;  %s1875_s23 = smov %s1649_s13 }
 0x2e2   : > { %s1876_s24 = smov %s1639_s30  ;;  %25 = sbr.rel (!%p23_p10) target bundleno = 12 (0xc), region = 114 }
 0x2e9   :  { %789 = vsyncpa [#allocation3], 1 }
 0x2ea   :  { %791 = vsyncpa [#allocation3 + $0x1], 1 }
 0x2eb   :  { %792 = vsyncpa [#allocation6], 1 }
 0x2ec   :  { %794 = vsyncpa [#allocation6 + $0x1], 1 }
 0x2ed   :  { %795 = vsyncpa [#allocation9], 1 }
 0x2ee   :  { %796 = vsyncpa [#allocation4], 1 }
 0x2ef   :  { %798 = vsyncpa [#allocation4 + $0x1], 1 }

</bundles_post_ra>
